<compile_context>
chip_gen: v7x
topology: tpu7x:2x2x1
jax: 0.10.0
libtpu: 0.0.40
codegen_flags: <defaults>
</compile_context>

<pallas_src>
import math
import functools

import jax
import jax.numpy as jnp
from jax import lax
from jax.experimental import pallas as pl
from jax.experimental.pallas import tpu as pltpu


def _layernorm(x, w, b, eps=1e-5):
    # PyTorch LayerNorm: biased variance over last dim.
    mu = jnp.mean(x, axis=-1, keepdims=True)
    var = jnp.mean((x - mu) ** 2, axis=-1, keepdims=True)
    return (x - mu) * lax.rsqrt(var + eps) * w + b


def _gelu_exact(x):
    # nn.GELU() default = exact erf formulation.
    return 0.5 * x * (1.0 + lax.erf(x * (1.0 / math.sqrt(2.0))))


def _cross_attention_kernel(
    q_ref, k_ref, v_ref,
    wq_ref, wk_ref, wv_ref, wo_ref,
    lnq_w_ref, lnq_b_ref, lnk_w_ref, lnk_b_ref, lno_w_ref, lno_b_ref,
    o_ref,
    *, num_heads, dim_o,
):
    bt, nq, dq_in = q_ref.shape
    _, nk, dk_in = k_ref.shape
    _, _, dv_in = v_ref.shape
    dq_out = wq_ref.shape[1]
    dh_q = dq_out // num_heads
    dh_v = dim_o // num_heads
    inv_temp = 1.0 / math.sqrt(dim_o)

    # Pre-layernorms on the whole (Bt, N, D) slab (f32 VPU math).
    q = _layernorm(q_ref[...], lnq_w_ref[...], lnq_b_ref[...])   # (Bt, Nq, Dq)
    k = _layernorm(k_ref[...], lnk_w_ref[...], lnk_b_ref[...])   # (Bt, Nk, Dk)
    v = v_ref[...]                                               # (Bt, Nk, Dv)

    # Projections as single large-M MXU matmuls (M = Bt*N rows); leading-dim reshapes
    # only (minor dims untouched -> no relayout).
    qp = jnp.dot(q.reshape(bt * nq, dq_in), wq_ref[...], preferred_element_type=jnp.float32)
    kp = jnp.dot(k.reshape(bt * nk, dk_in), wk_ref[...], preferred_element_type=jnp.float32)
    vp = jnp.dot(v.reshape(bt * nk, dv_in), wv_ref[...], preferred_element_type=jnp.float32)

    qp = qp.reshape(bt, nq, dq_out)
    kp = kp.reshape(bt, nk, dq_out)
    vp = vp.reshape(bt, nk, dim_o)

    head_outs = []
    for h in range(num_heads):            # static unroll; each head is Bt-batched
        qh = qp[:, :, h * dh_q:(h + 1) * dh_q]      # (Bt, Nq, dh_q)
        kh = kp[:, :, h * dh_q:(h + 1) * dh_q]      # (Bt, Nk, dh_q)
        vh = vp[:, :, h * dh_v:(h + 1) * dh_v]      # (Bt, Nk, dh_v)

        # Contraction on trailing dims (no kh.T / XLU transpose), batched over Bt.
        s = jnp.einsum('bqd,bkd->bqk', qh, kh,
                       preferred_element_type=jnp.float32) * inv_temp
        s = jnp.clip(s, -10000.0, 10000.0)
        # softmax over keys (dim=2 in the PyTorch code).  Exact divide (the approximate
        # EUP reciprocal previously used here pushed the final output off by ~5e-3).
        m = jnp.max(s, axis=-1, keepdims=True)
        e = jnp.exp(s - m)
        denom = jnp.sum(e, axis=-1, keepdims=True)
        attn = e / denom
        # TODO(synk): training-mode attn_dropout and the optional mask /
        # rel_time_encoding branches of the PyTorch forward are not implemented
        # (eval mode, default kwargs only).
        head_outs.append(jnp.einsum('bqk,bkd->bqd', attn, vh,
                                    preferred_element_type=jnp.float32))

    # Head-major concat along channels == torch.cat(split(.., dim_split, 2), 0) round-trip.
    o = jnp.concatenate(head_outs, axis=-1)            # (Bt, Nq, Do)

    # Output layernorm + residual GELU branch (fc_o as one big-M matmul).
    o = _layernorm(o, lno_w_ref[...], lno_b_ref[...])
    o2 = o.reshape(bt * nq, dim_o)
    o_proj = jnp.dot(o2, wo_ref[...], preferred_element_type=jnp.float32)
    o_out = o2 + _gelu_exact(o_proj)
    o_ref[...] = o_out.reshape(bt, nq, dim_o).astype(o_ref.dtype)


def _choose_batch_tile(B, Nq, Nk, Dq, Dk, Dv, Do, *,
                       target_rows=512, max_slab_bytes=4 << 20):
    """Pick how many batch elements to process per grid step.

    Big slabs amortize per-step pipeline overhead and feed the MXU >=128/256-row
    matmuls; the slab is capped well under VMEM (double-buffered Q/K/V/out tiles,
    budgeted for v7x's smaller 64 MiB VMEM).  If a single-step grid results but a
    >=2-step split still keeps >=128-row matmuls, prefer the split so both v7x
    TensorCores / megacore halves get work.
    """
    row_bytes = 4 * (Nq * Dq + Nk * (Dk + Dv) + Nq * Do)   # f32 bytes per batch element
    divisors = [d for d in range(1, B + 1) if B % d == 0]
    fitting = [d for d in divisors
               if d * max(Nq, Nk) <= max(target_rows, Nq, Nk)
               and d * row_bytes <= max_slab_bytes]
    bt = max(fitting) if fitting else 1
    if B // bt == 1 and B > 1:
        split = [d for d in divisors
                 if B // d >= 2 and d * Nq >= 128 and d * row_bytes <= max_slab_bytes]
        if split:
            bt = max(split)
    return bt


def cross_attention_pallas(Q, K, V, params, *, num_heads, batch_tile=None):
    B, Nq, Dq = Q.shape
    _, Nk, Dk = K.shape
    _, _, Dv = V.shape
    Dq_out = params["wq"].shape[1]
    Do = params["wv"].shape[1]

    Bt = batch_tile if batch_tile is not None else _choose_batch_tile(
        B, Nq, Nk, Dq, Dk, Dv, Do)
    assert B % Bt == 0, (B, Bt)

    # 1-D LayerNorm params reshaped to (1, D) for TPU-friendly 2-D layout.
    lnq_w = params["lnq_w"].reshape(1, Dq)
    lnq_b = params["lnq_b"].reshape(1, Dq)
    lnk_w = params["lnk_w"].reshape(1, Dk)
    lnk_b = params["lnk_b"].reshape(1, Dk)
    lno_w = params["lno_w"].reshape(1, Do)
    lno_b = params["lno_b"].reshape(1, Do)

    kernel = functools.partial(_cross_attention_kernel, num_heads=num_heads, dim_o=Do)

    # Weight / LN-param blocks have a constant index_map (resident across the grid).
    # NOTE: at large Dq/Do these could be single-buffered (pipeline_mode=pl.Buffered(1))
    # to reclaim the second buffer; irrelevant at these sizes.
    const = lambda shape: pl.BlockSpec(shape, lambda b: tuple(0 for _ in shape))

    return pl.pallas_call(
        kernel,
        out_shape=jax.ShapeDtypeStruct((B, Nq, Do), jnp.float32),
        grid_spec=pltpu.PrefetchScalarGridSpec(
            num_scalar_prefetch=0,
            grid=(B // Bt,),
            in_specs=[
                pl.BlockSpec((Bt, Nq, Dq), lambda b: (b, 0, 0)),   # Q slab
                pl.BlockSpec((Bt, Nk, Dk), lambda b: (b, 0, 0)),   # K slab
                pl.BlockSpec((Bt, Nk, Dv), lambda b: (b, 0, 0)),   # V slab
                const((Dq, Dq_out)),                               # Wq
                const((Dk, Dq_out)),                               # Wk
                const((Dv, Do)),                                   # Wv
                const((Do, Do)),                                   # Wo
                const((1, Dq)), const((1, Dq)),                    # pre_ln_q w, b
                const((1, Dk)), const((1, Dk)),                    # pre_ln_k w, b
                const((1, Do)), const((1, Do)),                    # ln w, b
            ],
            out_specs=pl.BlockSpec((Bt, Nq, Do), lambda b: (b, 0, 0)),
        ),
        compiler_params=pltpu.CompilerParams(dimension_semantics=("parallel",)),
    )(Q, K, V,
      params["wq"], params["wk"], params["wv"], params["wo"],
      lnq_w, lnq_b, lnk_w, lnk_b, lno_w, lno_b)


def cross_attention_ref(Q, K, V, params, *, num_heads):
    """Pure-JAX reference mirroring the PyTorch forward (eval mode).

    Matmuls use Precision.HIGHEST so the comparison against the in-kernel f32 MXU
    matmuls is apples-to-apples on real TPUs.
    """
    hi = lax.Precision.HIGHEST
    Do = params["wv"].shape[1]
    temperature = math.sqrt(Do)

    q = _layernorm(Q, params["lnq_w"], params["lnq_b"])
    k = _layernorm(K, params["lnk_w"], params["lnk_b"])
    qp = jnp.dot(q, params["wq"], precision=hi)
    kp = jnp.dot(k, params["wk"], precision=hi)
    vp = jnp.dot(V, params["wv"], precision=hi)

    # torch.cat(X.split(dh, 2), 0): head h lives in batch slice [h*B:(h+1)*B]
    Q_ = jnp.concatenate(jnp.split(qp, num_heads, axis=2), axis=0)
    K_ = jnp.concatenate(jnp.split(kp, num_heads, axis=2), axis=0)
    V_ = jnp.concatenate(jnp.split(vp, num_heads, axis=2), axis=0)

    L = jnp.einsum("bqd,bkd->bqk", Q_, K_, precision=hi) / temperature
    L = jnp.clip(L, -10000.0, 10000.0)
    A = jax.nn.softmax(L, axis=2)
    O = jnp.einsum("bqk,bkd->bqd", A, V_, precision=hi)
    O = jnp.concatenate(jnp.split(O, num_heads, axis=0), axis=2)   # (B, Nq, Do)

    O = _layernorm(O, params["lno_w"], params["lno_b"])
    O = O + jax.nn.gelu(jnp.dot(O, params["wo"], precision=hi), approximate=False)
    return O


if __name__ == "__main__":
    # Small shapes consistent with the module: dim_q == dim_k, separate dim_v, dim_o.
    B, Nq, Nk = 2, 8, 8
    dim_q = dim_k = 32
    dim_v = 32
    dim_o = 32
    num_heads = 4

    key = jax.random.PRNGKey(0)
    ks = jax.random.split(key, 8)
    Q = jax.random.normal(ks[0], (B, Nq, dim_q), jnp.float32)
    K = jax.random.normal(ks[1], (B, Nk, dim_k), jnp.float32)
    V = jax.random.normal(ks[2], (B, Nk, dim_v), jnp.float32)

    scale = 0.1
    params = {
        "wq": scale * jax.random.normal(ks[3], (dim_q, dim_q), jnp.float32),
        "wk": scale * jax.random.normal(ks[4], (dim_k, dim_q), jnp.float32),
        "wv": scale * jax.random.normal(ks[5], (dim_v, dim_o), jnp.float32),
        "wo": scale * jax.random.normal(ks[6], (dim_o, dim_o), jnp.float32),
        # LayerNorm params at PyTorch default init (weight=1, bias=0) -- still exercised.
        "lnq_w": jnp.ones((dim_q,), jnp.float32),
        "lnq_b": jnp.zeros((dim_q,), jnp.float32),
        "lnk_w": jnp.ones((dim_k,), jnp.float32),
        "lnk_b": jnp.zeros((dim_k,), jnp.float32),
        "lno_w": jnp.ones((dim_o,), jnp.float32),
        "lno_b": jnp.zeros((dim_o,), jnp.float32),
    }

    out = cross_attention_pallas(Q, K, V, params, num_heads=num_heads)
    out = jax.block_until_ready(out)

    ref = cross_attention_ref(Q, K, V, params, num_heads=num_heads)
    ref = jax.block_until_ready(ref)

    assert out.shape == (B, Nq, dim_o), out.shape
    assert jnp.allclose(out, ref, atol=2e-3, rtol=2e-3), float(jnp.max(jnp.abs(out - ref)))

    print("KERNEL_OK")
</pallas_src>

<mosaic_0001>
module attributes {stable_mosaic.version = 11 : i64} {
  func.func @_cross_attention_kernel(%arg0: i32, %arg1: memref<2x8x32xf32, #tpu.memory_space<vmem>>, %arg2: memref<2x8x32xf32, #tpu.memory_space<vmem>>, %arg3: memref<2x8x32xf32, #tpu.memory_space<vmem>>, %arg4: memref<32x32xf32, #tpu.memory_space<vmem>>, %arg5: memref<32x32xf32, #tpu.memory_space<vmem>>, %arg6: memref<32x32xf32, #tpu.memory_space<vmem>>, %arg7: memref<32x32xf32, #tpu.memory_space<vmem>>, %arg8: memref<1x32xf32, #tpu.memory_space<vmem>>, %arg9: memref<1x32xf32, #tpu.memory_space<vmem>>, %arg10: memref<1x32xf32, #tpu.memory_space<vmem>>, %arg11: memref<1x32xf32, #tpu.memory_space<vmem>>, %arg12: memref<1x32xf32, #tpu.memory_space<vmem>>, %arg13: memref<1x32xf32, #tpu.memory_space<vmem>>, %arg14: memref<2x8x32xf32, #tpu.memory_space<vmem>>) attributes {dimension_semantics = [#tpu.dimension_semantics<parallel>], iteration_bounds = array<i64: 1>, scalar_prefetch = 0 : i64, scratch_operands = 0 : i64, tpu.core_type = #tpu.core_type<tc>, window_params = [{transform_indices = @transform_0, window_bounds = array<i64: 2, 8, 32>}, {transform_indices = @transform_1, window_bounds = array<i64: 2, 8, 32>}, {transform_indices = @transform_2, window_bounds = array<i64: 2, 8, 32>}, {pipeline_mode = #tpu.pipeline_mode<synchronous>, transform_indices = @transform_3, window_bounds = array<i64: 32, 32>}, {pipeline_mode = #tpu.pipeline_mode<synchronous>, transform_indices = @transform_4, window_bounds = array<i64: 32, 32>}, {pipeline_mode = #tpu.pipeline_mode<synchronous>, transform_indices = @transform_5, window_bounds = array<i64: 32, 32>}, {pipeline_mode = #tpu.pipeline_mode<synchronous>, transform_indices = @transform_6, window_bounds = array<i64: 32, 32>}, {pipeline_mode = #tpu.pipeline_mode<synchronous>, transform_indices = @transform_7, window_bounds = array<i64: 1, 32>}, {pipeline_mode = #tpu.pipeline_mode<synchronous>, transform_indices = @transform_8, window_bounds = array<i64: 1, 32>}, {pipeline_mode = #tpu.pipeline_mode<synchronous>, transform_indices = @transform_9, window_bounds = array<i64: 1, 32>}, {pipeline_mode = #tpu.pipeline_mode<synchronous>, transform_indices = @transform_10, window_bounds = array<i64: 1, 32>}, {pipeline_mode = #tpu.pipeline_mode<synchronous>, transform_indices = @transform_11, window_bounds = array<i64: 1, 32>}, {pipeline_mode = #tpu.pipeline_mode<synchronous>, transform_indices = @transform_12, window_bounds = array<i64: 1, 32>}, {transform_indices = @transform_13, window_bounds = array<i64: 2, 8, 32>}]} {
    %c0 = arith.constant 0 : index
    %c0_0 = arith.constant 0 : index
    %c0_1 = arith.constant 0 : index
    %0 = vector.load %arg1[%c0, %c0_0, %c0_1] : memref<2x8x32xf32, #tpu.memory_space<vmem>>, vector<2x8x32xf32>
    %c0_2 = arith.constant 0 : index
    %c0_3 = arith.constant 0 : index
    %1 = vector.load %arg8[%c0_2, %c0_3] : memref<1x32xf32, #tpu.memory_space<vmem>>, vector<1x32xf32>
    %c0_4 = arith.constant 0 : index
    %c0_5 = arith.constant 0 : index
    %2 = vector.load %arg9[%c0_4, %c0_5] : memref<1x32xf32, #tpu.memory_space<vmem>>, vector<1x32xf32>
    %cst = arith.constant dense<0.000000e+00> : vector<2x8xf32>
    %3 = vector.multi_reduction <add>, %0, %cst [2] : vector<2x8x32xf32> to vector<2x8xf32>
    %4 = vector.shape_cast %3 : vector<2x8xf32> to vector<2x8x1xf32>
    %cst_6 = arith.constant 3.200000e+01 : f32
    %5 = vector.broadcast %cst_6 : f32 to vector<2x8x1xf32>
    %6 = arith.divf %4, %5 : vector<2x8x1xf32>
    %7 = vector.broadcast %6 : vector<2x8x1xf32> to vector<2x8x32xf32>
    %8 = arith.subf %0, %7 : vector<2x8x32xf32>
    %9 = arith.mulf %8, %8 : vector<2x8x32xf32>
    %cst_7 = arith.constant dense<0.000000e+00> : vector<2x8xf32>
    %10 = vector.multi_reduction <add>, %9, %cst_7 [2] : vector<2x8x32xf32> to vector<2x8xf32>
    %11 = vector.shape_cast %10 : vector<2x8xf32> to vector<2x8x1xf32>
    %cst_8 = arith.constant 3.200000e+01 : f32
    %12 = vector.broadcast %cst_8 : f32 to vector<2x8x1xf32>
    %13 = arith.divf %11, %12 : vector<2x8x1xf32>
    %14 = vector.broadcast %6 : vector<2x8x1xf32> to vector<2x8x32xf32>
    %15 = arith.subf %0, %14 : vector<2x8x32xf32>
    %cst_9 = arith.constant 9.99999974E-6 : f32
    %16 = vector.broadcast %cst_9 : f32 to vector<2x8x1xf32>
    %17 = arith.addf %13, %16 : vector<2x8x1xf32>
    %18 = math.rsqrt %17 : vector<2x8x1xf32>
    %19 = vector.broadcast %18 : vector<2x8x1xf32> to vector<2x8x32xf32>
    %20 = arith.mulf %15, %19 : vector<2x8x32xf32>
    %21 = vector.shape_cast %1 : vector<1x32xf32> to vector<1x1x32xf32>
    %22 = vector.broadcast %21 : vector<1x1x32xf32> to vector<2x8x32xf32>
    %23 = arith.mulf %20, %22 : vector<2x8x32xf32>
    %24 = vector.shape_cast %2 : vector<1x32xf32> to vector<1x1x32xf32>
    %25 = vector.broadcast %24 : vector<1x1x32xf32> to vector<2x8x32xf32>
    %26 = arith.addf %23, %25 : vector<2x8x32xf32>
    %c0_10 = arith.constant 0 : index
    %c0_11 = arith.constant 0 : index
    %c0_12 = arith.constant 0 : index
    %27 = vector.load %arg2[%c0_10, %c0_11, %c0_12] : memref<2x8x32xf32, #tpu.memory_space<vmem>>, vector<2x8x32xf32>
    %c0_13 = arith.constant 0 : index
    %c0_14 = arith.constant 0 : index
    %28 = vector.load %arg10[%c0_13, %c0_14] : memref<1x32xf32, #tpu.memory_space<vmem>>, vector<1x32xf32>
    %c0_15 = arith.constant 0 : index
    %c0_16 = arith.constant 0 : index
    %29 = vector.load %arg11[%c0_15, %c0_16] : memref<1x32xf32, #tpu.memory_space<vmem>>, vector<1x32xf32>
    %cst_17 = arith.constant dense<0.000000e+00> : vector<2x8xf32>
    %30 = vector.multi_reduction <add>, %27, %cst_17 [2] : vector<2x8x32xf32> to vector<2x8xf32>
    %31 = vector.shape_cast %30 : vector<2x8xf32> to vector<2x8x1xf32>
    %cst_18 = arith.constant 3.200000e+01 : f32
    %32 = vector.broadcast %cst_18 : f32 to vector<2x8x1xf32>
    %33 = arith.divf %31, %32 : vector<2x8x1xf32>
    %34 = vector.broadcast %33 : vector<2x8x1xf32> to vector<2x8x32xf32>
    %35 = arith.subf %27, %34 : vector<2x8x32xf32>
    %36 = arith.mulf %35, %35 : vector<2x8x32xf32>
    %cst_19 = arith.constant dense<0.000000e+00> : vector<2x8xf32>
    %37 = vector.multi_reduction <add>, %36, %cst_19 [2] : vector<2x8x32xf32> to vector<2x8xf32>
    %38 = vector.shape_cast %37 : vector<2x8xf32> to vector<2x8x1xf32>
    %cst_20 = arith.constant 3.200000e+01 : f32
    %39 = vector.broadcast %cst_20 : f32 to vector<2x8x1xf32>
    %40 = arith.divf %38, %39 : vector<2x8x1xf32>
    %41 = vector.broadcast %33 : vector<2x8x1xf32> to vector<2x8x32xf32>
    %42 = arith.subf %27, %41 : vector<2x8x32xf32>
    %cst_21 = arith.constant 9.99999974E-6 : f32
    %43 = vector.broadcast %cst_21 : f32 to vector<2x8x1xf32>
    %44 = arith.addf %40, %43 : vector<2x8x1xf32>
    %45 = math.rsqrt %44 : vector<2x8x1xf32>
    %46 = vector.broadcast %45 : vector<2x8x1xf32> to vector<2x8x32xf32>
    %47 = arith.mulf %42, %46 : vector<2x8x32xf32>
    %48 = vector.shape_cast %28 : vector<1x32xf32> to vector<1x1x32xf32>
    %49 = vector.broadcast %48 : vector<1x1x32xf32> to vector<2x8x32xf32>
    %50 = arith.mulf %47, %49 : vector<2x8x32xf32>
    %51 = vector.shape_cast %29 : vector<1x32xf32> to vector<1x1x32xf32>
    %52 = vector.broadcast %51 : vector<1x1x32xf32> to vector<2x8x32xf32>
    %53 = arith.addf %50, %52 : vector<2x8x32xf32>
    %c0_22 = arith.constant 0 : index
    %c0_23 = arith.constant 0 : index
    %c0_24 = arith.constant 0 : index
    %54 = vector.load %arg3[%c0_22, %c0_23, %c0_24] : memref<2x8x32xf32, #tpu.memory_space<vmem>>, vector<2x8x32xf32>
    %55 = vector.shape_cast %26 : vector<2x8x32xf32> to vector<16x32xf32>
    %c0_25 = arith.constant 0 : index
    %c0_26 = arith.constant 0 : index
    %56 = vector.load %arg4[%c0_25, %c0_26] : memref<32x32xf32, #tpu.memory_space<vmem>>, vector<32x32xf32>
    %cst_27 = arith.constant dense<0.000000e+00> : vector<16x32xf32>
    %57 = tpu.matmul %55, %56, %cst_27 {dimension_numbers = #tpu.dot_dimension_numbers<[1], [0], [0], [1], [0, 0, 1, 1], [], []>} : vector<16x32xf32>, vector<32x32xf32>, vector<16x32xf32> -> vector<16x32xf32>
    %58 = vector.shape_cast %53 : vector<2x8x32xf32> to vector<16x32xf32>
    %c0_28 = arith.constant 0 : index
    %c0_29 = arith.constant 0 : index
    %59 = vector.load %arg5[%c0_28, %c0_29] : memref<32x32xf32, #tpu.memory_space<vmem>>, vector<32x32xf32>
    %cst_30 = arith.constant dense<0.000000e+00> : vector<16x32xf32>
    %60 = tpu.matmul %58, %59, %cst_30 {dimension_numbers = #tpu.dot_dimension_numbers<[1], [0], [0], [1], [0, 0, 1, 1], [], []>} : vector<16x32xf32>, vector<32x32xf32>, vector<16x32xf32> -> vector<16x32xf32>
    %61 = vector.shape_cast %54 : vector<2x8x32xf32> to vector<16x32xf32>
    %c0_31 = arith.constant 0 : index
    %c0_32 = arith.constant 0 : index
    %62 = vector.load %arg6[%c0_31, %c0_32] : memref<32x32xf32, #tpu.memory_space<vmem>>, vector<32x32xf32>
    %cst_33 = arith.constant dense<0.000000e+00> : vector<16x32xf32>
    %63 = tpu.matmul %61, %62, %cst_33 {dimension_numbers = #tpu.dot_dimension_numbers<[1], [0], [0], [1], [0, 0, 1, 1], [], []>} : vector<16x32xf32>, vector<32x32xf32>, vector<16x32xf32> -> vector<16x32xf32>
    %64 = vector.shape_cast %57 : vector<16x32xf32> to vector<2x8x32xf32>
    %65 = vector.shape_cast %60 : vector<16x32xf32> to vector<2x8x32xf32>
    %66 = vector.shape_cast %63 : vector<16x32xf32> to vector<2x8x32xf32>
    %67 = vector.extract_strided_slice %64 {offsets = [0, 0, 0], sizes = [2, 8, 8], strides = [1, 1, 1]} : vector<2x8x32xf32> to vector<2x8x8xf32>
    %68 = vector.extract_strided_slice %65 {offsets = [0, 0, 0], sizes = [2, 8, 8], strides = [1, 1, 1]} : vector<2x8x32xf32> to vector<2x8x8xf32>
    %69 = vector.extract_strided_slice %66 {offsets = [0, 0, 0], sizes = [2, 8, 8], strides = [1, 1, 1]} : vector<2x8x32xf32> to vector<2x8x8xf32>
    "tpu.trace_start"() <{level = 10 : i32, message = "bqd,bkd->bqk"}> : () -> ()
    %cst_34 = arith.constant dense<0.000000e+00> : vector<2x8x8xf32>
    %70 = tpu.matmul %67, %68, %cst_34 {dimension_numbers = #tpu.dot_dimension_numbers<[2], [2], [1], [1], [0, 0, 0, 1, 1, 1], [0], [0]>} : vector<2x8x8xf32>, vector<2x8x8xf32>, vector<2x8x8xf32> -> vector<2x8x8xf32>
    "tpu.trace_stop"() : () -> ()
    %cst_35 = arith.constant 0.176776692 : f32
    %71 = vector.broadcast %cst_35 : f32 to vector<2x8x8xf32>
    %72 = arith.mulf %70, %71 : vector<2x8x8xf32>
    %cst_36 = arith.constant -1.000000e+04 : f32
    %cst_37 = arith.constant 1.000000e+04 : f32
    %73 = vector.broadcast %cst_36 : f32 to vector<2x8x8xf32>
    %74 = arith.maximumf %73, %72 : vector<2x8x8xf32>
    %75 = vector.broadcast %cst_37 : f32 to vector<2x8x8xf32>
    %76 = arith.minimumf %75, %74 : vector<2x8x8xf32>
    %cst_38 = arith.constant dense<0xFF800000> : vector<2x8xf32>
    %77 = vector.multi_reduction <maximumf>, %76, %cst_38 [2] : vector<2x8x8xf32> to vector<2x8xf32>
    %78 = vector.shape_cast %77 : vector<2x8xf32> to vector<2x8x1xf32>
    %79 = vector.broadcast %78 : vector<2x8x1xf32> to vector<2x8x8xf32>
    %80 = arith.subf %76, %79 : vector<2x8x8xf32>
    %81 = math.exp %80 : vector<2x8x8xf32>
    %cst_39 = arith.constant dense<0.000000e+00> : vector<2x8xf32>
    %82 = vector.multi_reduction <add>, %81, %cst_39 [2] : vector<2x8x8xf32> to vector<2x8xf32>
    %83 = vector.shape_cast %82 : vector<2x8xf32> to vector<2x8x1xf32>
    %84 = vector.broadcast %83 : vector<2x8x1xf32> to vector<2x8x8xf32>
    %85 = arith.divf %81, %84 : vector<2x8x8xf32>
    "tpu.trace_start"() <{level = 10 : i32, message = "bqk,bkd->bqd"}> : () -> ()
    %cst_40 = arith.constant dense<0.000000e+00> : vector<2x8x8xf32>
    %86 = tpu.matmul %85, %69, %cst_40 {dimension_numbers = #tpu.dot_dimension_numbers<[2], [1], [1], [2], [0, 0, 0, 1, 1, 2], [0], [0]>} : vector<2x8x8xf32>, vector<2x8x8xf32>, vector<2x8x8xf32> -> vector<2x8x8xf32>
    "tpu.trace_stop"() : () -> ()
    %87 = vector.extract_strided_slice %64 {offsets = [0, 0, 8], sizes = [2, 8, 8], strides = [1, 1, 1]} : vector<2x8x32xf32> to vector<2x8x8xf32>
    %88 = vector.extract_strided_slice %65 {offsets = [0, 0, 8], sizes = [2, 8, 8], strides = [1, 1, 1]} : vector<2x8x32xf32> to vector<2x8x8xf32>
    %89 = vector.extract_strided_slice %66 {offsets = [0, 0, 8], sizes = [2, 8, 8], strides = [1, 1, 1]} : vector<2x8x32xf32> to vector<2x8x8xf32>
    "tpu.trace_start"() <{level = 10 : i32, message = "bqd,bkd->bqk"}> : () -> ()
    %cst_41 = arith.constant dense<0.000000e+00> : vector<2x8x8xf32>
    %90 = tpu.matmul %87, %88, %cst_41 {dimension_numbers = #tpu.dot_dimension_numbers<[2], [2], [1], [1], [0, 0, 0, 1, 1, 1], [0], [0]>} : vector<2x8x8xf32>, vector<2x8x8xf32>, vector<2x8x8xf32> -> vector<2x8x8xf32>
    "tpu.trace_stop"() : () -> ()
    %cst_42 = arith.constant 0.176776692 : f32
    %91 = vector.broadcast %cst_42 : f32 to vector<2x8x8xf32>
    %92 = arith.mulf %90, %91 : vector<2x8x8xf32>
    %cst_43 = arith.constant -1.000000e+04 : f32
    %cst_44 = arith.constant 1.000000e+04 : f32
    %93 = vector.broadcast %cst_43 : f32 to vector<2x8x8xf32>
    %94 = arith.maximumf %93, %92 : vector<2x8x8xf32>
    %95 = vector.broadcast %cst_44 : f32 to vector<2x8x8xf32>
    %96 = arith.minimumf %95, %94 : vector<2x8x8xf32>
    %cst_45 = arith.constant dense<0xFF800000> : vector<2x8xf32>
    %97 = vector.multi_reduction <maximumf>, %96, %cst_45 [2] : vector<2x8x8xf32> to vector<2x8xf32>
    %98 = vector.shape_cast %97 : vector<2x8xf32> to vector<2x8x1xf32>
    %99 = vector.broadcast %98 : vector<2x8x1xf32> to vector<2x8x8xf32>
    %100 = arith.subf %96, %99 : vector<2x8x8xf32>
    %101 = math.exp %100 : vector<2x8x8xf32>
    %cst_46 = arith.constant dense<0.000000e+00> : vector<2x8xf32>
    %102 = vector.multi_reduction <add>, %101, %cst_46 [2] : vector<2x8x8xf32> to vector<2x8xf32>
    %103 = vector.shape_cast %102 : vector<2x8xf32> to vector<2x8x1xf32>
    %104 = vector.broadcast %103 : vector<2x8x1xf32> to vector<2x8x8xf32>
    %105 = arith.divf %101, %104 : vector<2x8x8xf32>
    "tpu.trace_start"() <{level = 10 : i32, message = "bqk,bkd->bqd"}> : () -> ()
    %cst_47 = arith.constant dense<0.000000e+00> : vector<2x8x8xf32>
    %106 = tpu.matmul %105, %89, %cst_47 {dimension_numbers = #tpu.dot_dimension_numbers<[2], [1], [1], [2], [0, 0, 0, 1, 1, 2], [0], [0]>} : vector<2x8x8xf32>, vector<2x8x8xf32>, vector<2x8x8xf32> -> vector<2x8x8xf32>
    "tpu.trace_stop"() : () -> ()
    %107 = vector.extract_strided_slice %64 {offsets = [0, 0, 16], sizes = [2, 8, 8], strides = [1, 1, 1]} : vector<2x8x32xf32> to vector<2x8x8xf32>
    %108 = vector.extract_strided_slice %65 {offsets = [0, 0, 16], sizes = [2, 8, 8], strides = [1, 1, 1]} : vector<2x8x32xf32> to vector<2x8x8xf32>
    %109 = vector.extract_strided_slice %66 {offsets = [0, 0, 16], sizes = [2, 8, 8], strides = [1, 1, 1]} : vector<2x8x32xf32> to vector<2x8x8xf32>
    "tpu.trace_start"() <{level = 10 : i32, message = "bqd,bkd->bqk"}> : () -> ()
    %cst_48 = arith.constant dense<0.000000e+00> : vector<2x8x8xf32>
    %110 = tpu.matmul %107, %108, %cst_48 {dimension_numbers = #tpu.dot_dimension_numbers<[2], [2], [1], [1], [0, 0, 0, 1, 1, 1], [0], [0]>} : vector<2x8x8xf32>, vector<2x8x8xf32>, vector<2x8x8xf32> -> vector<2x8x8xf32>
    "tpu.trace_stop"() : () -> ()
    %cst_49 = arith.constant 0.176776692 : f32
    %111 = vector.broadcast %cst_49 : f32 to vector<2x8x8xf32>
    %112 = arith.mulf %110, %111 : vector<2x8x8xf32>
    %cst_50 = arith.constant -1.000000e+04 : f32
    %cst_51 = arith.constant 1.000000e+04 : f32
    %113 = vector.broadcast %cst_50 : f32 to vector<2x8x8xf32>
    %114 = arith.maximumf %113, %112 : vector<2x8x8xf32>
    %115 = vector.broadcast %cst_51 : f32 to vector<2x8x8xf32>
    %116 = arith.minimumf %115, %114 : vector<2x8x8xf32>
    %cst_52 = arith.constant dense<0xFF800000> : vector<2x8xf32>
    %117 = vector.multi_reduction <maximumf>, %116, %cst_52 [2] : vector<2x8x8xf32> to vector<2x8xf32>
    %118 = vector.shape_cast %117 : vector<2x8xf32> to vector<2x8x1xf32>
    %119 = vector.broadcast %118 : vector<2x8x1xf32> to vector<2x8x8xf32>
    %120 = arith.subf %116, %119 : vector<2x8x8xf32>
    %121 = math.exp %120 : vector<2x8x8xf32>
    %cst_53 = arith.constant dense<0.000000e+00> : vector<2x8xf32>
    %122 = vector.multi_reduction <add>, %121, %cst_53 [2] : vector<2x8x8xf32> to vector<2x8xf32>
    %123 = vector.shape_cast %122 : vector<2x8xf32> to vector<2x8x1xf32>
    %124 = vector.broadcast %123 : vector<2x8x1xf32> to vector<2x8x8xf32>
    %125 = arith.divf %121, %124 : vector<2x8x8xf32>
    "tpu.trace_start"() <{level = 10 : i32, message = "bqk,bkd->bqd"}> : () -> ()
    %cst_54 = arith.constant dense<0.000000e+00> : vector<2x8x8xf32>
    %126 = tpu.matmul %125, %109, %cst_54 {dimension_numbers = #tpu.dot_dimension_numbers<[2], [1], [1], [2], [0, 0, 0, 1, 1, 2], [0], [0]>} : vector<2x8x8xf32>, vector<2x8x8xf32>, vector<2x8x8xf32> -> vector<2x8x8xf32>
    "tpu.trace_stop"() : () -> ()
    %127 = vector.extract_strided_slice %64 {offsets = [0, 0, 24], sizes = [2, 8, 8], strides = [1, 1, 1]} : vector<2x8x32xf32> to vector<2x8x8xf32>
    %128 = vector.extract_strided_slice %65 {offsets = [0, 0, 24], sizes = [2, 8, 8], strides = [1, 1, 1]} : vector<2x8x32xf32> to vector<2x8x8xf32>
    %129 = vector.extract_strided_slice %66 {offsets = [0, 0, 24], sizes = [2, 8, 8], strides = [1, 1, 1]} : vector<2x8x32xf32> to vector<2x8x8xf32>
    "tpu.trace_start"() <{level = 10 : i32, message = "bqd,bkd->bqk"}> : () -> ()
    %cst_55 = arith.constant dense<0.000000e+00> : vector<2x8x8xf32>
    %130 = tpu.matmul %127, %128, %cst_55 {dimension_numbers = #tpu.dot_dimension_numbers<[2], [2], [1], [1], [0, 0, 0, 1, 1, 1], [0], [0]>} : vector<2x8x8xf32>, vector<2x8x8xf32>, vector<2x8x8xf32> -> vector<2x8x8xf32>
    "tpu.trace_stop"() : () -> ()
    %cst_56 = arith.constant 0.176776692 : f32
    %131 = vector.broadcast %cst_56 : f32 to vector<2x8x8xf32>
    %132 = arith.mulf %130, %131 : vector<2x8x8xf32>
    %cst_57 = arith.constant -1.000000e+04 : f32
    %cst_58 = arith.constant 1.000000e+04 : f32
    %133 = vector.broadcast %cst_57 : f32 to vector<2x8x8xf32>
    %134 = arith.maximumf %133, %132 : vector<2x8x8xf32>
    %135 = vector.broadcast %cst_58 : f32 to vector<2x8x8xf32>
    %136 = arith.minimumf %135, %134 : vector<2x8x8xf32>
    %cst_59 = arith.constant dense<0xFF800000> : vector<2x8xf32>
    %137 = vector.multi_reduction <maximumf>, %136, %cst_59 [2] : vector<2x8x8xf32> to vector<2x8xf32>
    %138 = vector.shape_cast %137 : vector<2x8xf32> to vector<2x8x1xf32>
    %139 = vector.broadcast %138 : vector<2x8x1xf32> to vector<2x8x8xf32>
    %140 = arith.subf %136, %139 : vector<2x8x8xf32>
    %141 = math.exp %140 : vector<2x8x8xf32>
    %cst_60 = arith.constant dense<0.000000e+00> : vector<2x8xf32>
    %142 = vector.multi_reduction <add>, %141, %cst_60 [2] : vector<2x8x8xf32> to vector<2x8xf32>
    %143 = vector.shape_cast %142 : vector<2x8xf32> to vector<2x8x1xf32>
    %144 = vector.broadcast %143 : vector<2x8x1xf32> to vector<2x8x8xf32>
    %145 = arith.divf %141, %144 : vector<2x8x8xf32>
    "tpu.trace_start"() <{level = 10 : i32, message = "bqk,bkd->bqd"}> : () -> ()
    %cst_61 = arith.constant dense<0.000000e+00> : vector<2x8x8xf32>
    %146 = tpu.matmul %145, %129, %cst_61 {dimension_numbers = #tpu.dot_dimension_numbers<[2], [1], [1], [2], [0, 0, 0, 1, 1, 2], [0], [0]>} : vector<2x8x8xf32>, vector<2x8x8xf32>, vector<2x8x8xf32> -> vector<2x8x8xf32>
    "tpu.trace_stop"() : () -> ()
    %147 = tpu.concatenate %86, %106, %126, %146 in 2 : vector<2x8x8xf32>, vector<2x8x8xf32>, vector<2x8x8xf32>, vector<2x8x8xf32> -> vector<2x8x32xf32>
    %c0_62 = arith.constant 0 : index
    %c0_63 = arith.constant 0 : index
    %148 = vector.load %arg12[%c0_62, %c0_63] : memref<1x32xf32, #tpu.memory_space<vmem>>, vector<1x32xf32>
    %c0_64 = arith.constant 0 : index
    %c0_65 = arith.constant 0 : index
    %149 = vector.load %arg13[%c0_64, %c0_65] : memref<1x32xf32, #tpu.memory_space<vmem>>, vector<1x32xf32>
    %cst_66 = arith.constant dense<0.000000e+00> : vector<2x8xf32>
    %150 = vector.multi_reduction <add>, %147, %cst_66 [2] : vector<2x8x32xf32> to vector<2x8xf32>
    %151 = vector.shape_cast %150 : vector<2x8xf32> to vector<2x8x1xf32>
    %cst_67 = arith.constant 3.200000e+01 : f32
    %152 = vector.broadcast %cst_67 : f32 to vector<2x8x1xf32>
    %153 = arith.divf %151, %152 : vector<2x8x1xf32>
    %154 = vector.broadcast %153 : vector<2x8x1xf32> to vector<2x8x32xf32>
    %155 = arith.subf %147, %154 : vector<2x8x32xf32>
    %156 = arith.mulf %155, %155 : vector<2x8x32xf32>
    %cst_68 = arith.constant dense<0.000000e+00> : vector<2x8xf32>
    %157 = vector.multi_reduction <add>, %156, %cst_68 [2] : vector<2x8x32xf32> to vector<2x8xf32>
    %158 = vector.shape_cast %157 : vector<2x8xf32> to vector<2x8x1xf32>
    %cst_69 = arith.constant 3.200000e+01 : f32
    %159 = vector.broadcast %cst_69 : f32 to vector<2x8x1xf32>
    %160 = arith.divf %158, %159 : vector<2x8x1xf32>
    %161 = vector.broadcast %153 : vector<2x8x1xf32> to vector<2x8x32xf32>
    %162 = arith.subf %147, %161 : vector<2x8x32xf32>
    %cst_70 = arith.constant 9.99999974E-6 : f32
    %163 = vector.broadcast %cst_70 : f32 to vector<2x8x1xf32>
    %164 = arith.addf %160, %163 : vector<2x8x1xf32>
    %165 = math.rsqrt %164 : vector<2x8x1xf32>
    %166 = vector.broadcast %165 : vector<2x8x1xf32> to vector<2x8x32xf32>
    %167 = arith.mulf %162, %166 : vector<2x8x32xf32>
    %168 = vector.shape_cast %148 : vector<1x32xf32> to vector<1x1x32xf32>
    %169 = vector.broadcast %168 : vector<1x1x32xf32> to vector<2x8x32xf32>
    %170 = arith.mulf %167, %169 : vector<2x8x32xf32>
    %171 = vector.shape_cast %149 : vector<1x32xf32> to vector<1x1x32xf32>
    %172 = vector.broadcast %171 : vector<1x1x32xf32> to vector<2x8x32xf32>
    %173 = arith.addf %170, %172 : vector<2x8x32xf32>
    %174 = vector.shape_cast %173 : vector<2x8x32xf32> to vector<16x32xf32>
    %c0_71 = arith.constant 0 : index
    %c0_72 = arith.constant 0 : index
    %175 = vector.load %arg7[%c0_71, %c0_72] : memref<32x32xf32, #tpu.memory_space<vmem>>, vector<32x32xf32>
    %cst_73 = arith.constant dense<0.000000e+00> : vector<16x32xf32>
    %176 = tpu.matmul %174, %175, %cst_73 {dimension_numbers = #tpu.dot_dimension_numbers<[1], [0], [0], [1], [0, 0, 1, 1], [], []>} : vector<16x32xf32>, vector<32x32xf32>, vector<16x32xf32> -> vector<16x32xf32>
    %cst_74 = arith.constant 5.000000e-01 : f32
    %177 = vector.broadcast %cst_74 : f32 to vector<16x32xf32>
    %178 = arith.mulf %177, %176 : vector<16x32xf32>
    %cst_75 = arith.constant 0.707106769 : f32
    %179 = vector.broadcast %cst_75 : f32 to vector<16x32xf32>
    %180 = arith.mulf %176, %179 : vector<16x32xf32>
    %181 = math.erf %180 : vector<16x32xf32>
    %cst_76 = arith.constant 1.000000e+00 : f32
    %182 = vector.broadcast %cst_76 : f32 to vector<16x32xf32>
    %183 = arith.addf %182, %181 : vector<16x32xf32>
    %184 = arith.mulf %178, %183 : vector<16x32xf32>
    %185 = arith.addf %174, %184 : vector<16x32xf32>
    %186 = vector.shape_cast %185 : vector<16x32xf32> to vector<2x8x32xf32>
    %c0_77 = arith.constant 0 : index
    %c0_78 = arith.constant 0 : index
    %c0_79 = arith.constant 0 : index
    %187 = vector.load %arg14[%c0_77, %c0_78, %c0_79] : memref<2x8x32xf32, #tpu.memory_space<vmem>>, vector<2x8x32xf32>
    tpu.vector_store %arg14[%c0_77, %c0_78, %c0_79], %186 {strides = array<i32>} : memref<2x8x32xf32, #tpu.memory_space<vmem>>, vector<2x8x32xf32>,
    return
  }
  func.func @transform_0(%arg0: i32) -> (i32, i32, i32) {
    %c0_i32 = arith.constant 0 : i32
    %c0_i32_0 = arith.constant 0 : i32
    %c0_i32_1 = arith.constant 0 : i32
    return %arg0, %c0_i32, %c0_i32_0 : i32, i32, i32
  }
  func.func @transform_1(%arg0: i32) -> (i32, i32, i32) {
    %c0_i32 = arith.constant 0 : i32
    %c0_i32_0 = arith.constant 0 : i32
    %c0_i32_1 = arith.constant 0 : i32
    return %arg0, %c0_i32, %c0_i32_0 : i32, i32, i32
  }
  func.func @transform_2(%arg0: i32) -> (i32, i32, i32) {
    %c0_i32 = arith.constant 0 : i32
    %c0_i32_0 = arith.constant 0 : i32
    %c0_i32_1 = arith.constant 0 : i32
    return %arg0, %c0_i32, %c0_i32_0 : i32, i32, i32
  }
  func.func @transform_3(%arg0: i32) -> (i32, i32) {
    %c0_i32 = arith.constant 0 : i32
    %c0_i32_0 = arith.constant 0 : i32
    %c0_i32_1 = arith.constant 0 : i32
    return %c0_i32, %c0_i32_0 : i32, i32
  }
  func.func @transform_4(%arg0: i32) -> (i32, i32) {
    %c0_i32 = arith.constant 0 : i32
    %c0_i32_0 = arith.constant 0 : i32
    %c0_i32_1 = arith.constant 0 : i32
    return %c0_i32, %c0_i32_0 : i32, i32
  }
  func.func @transform_5(%arg0: i32) -> (i32, i32) {
    %c0_i32 = arith.constant 0 : i32
    %c0_i32_0 = arith.constant 0 : i32
    %c0_i32_1 = arith.constant 0 : i32
    return %c0_i32, %c0_i32_0 : i32, i32
  }
  func.func @transform_6(%arg0: i32) -> (i32, i32) {
    %c0_i32 = arith.constant 0 : i32
    %c0_i32_0 = arith.constant 0 : i32
    %c0_i32_1 = arith.constant 0 : i32
    return %c0_i32, %c0_i32_0 : i32, i32
  }
  func.func @transform_7(%arg0: i32) -> (i32, i32) {
    %c0_i32 = arith.constant 0 : i32
    %c0_i32_0 = arith.constant 0 : i32
    %c0_i32_1 = arith.constant 0 : i32
    return %c0_i32, %c0_i32_0 : i32, i32
  }
  func.func @transform_8(%arg0: i32) -> (i32, i32) {
    %c0_i32 = arith.constant 0 : i32
    %c0_i32_0 = arith.constant 0 : i32
    %c0_i32_1 = arith.constant 0 : i32
    return %c0_i32, %c0_i32_0 : i32, i32
  }
  func.func @transform_9(%arg0: i32) -> (i32, i32) {
    %c0_i32 = arith.constant 0 : i32
    %c0_i32_0 = arith.constant 0 : i32
    %c0_i32_1 = arith.constant 0 : i32
    return %c0_i32, %c0_i32_0 : i32, i32
  }
  func.func @transform_10(%arg0: i32) -> (i32, i32) {
    %c0_i32 = arith.constant 0 : i32
    %c0_i32_0 = arith.constant 0 : i32
    %c0_i32_1 = arith.constant 0 : i32
    return %c0_i32, %c0_i32_0 : i32, i32
  }
  func.func @transform_11(%arg0: i32) -> (i32, i32) {
    %c0_i32 = arith.constant 0 : i32
    %c0_i32_0 = arith.constant 0 : i32
    %c0_i32_1 = arith.constant 0 : i32
    return %c0_i32, %c0_i32_0 : i32, i32
  }
  func.func @transform_12(%arg0: i32) -> (i32, i32) {
    %c0_i32 = arith.constant 0 : i32
    %c0_i32_0 = arith.constant 0 : i32
    %c0_i32_1 = arith.constant 0 : i32
    return %c0_i32, %c0_i32_0 : i32, i32
  }
  func.func @transform_13(%arg0: i32) -> (i32, i32, i32) {
    %c0_i32 = arith.constant 0 : i32
    %c0_i32_0 = arith.constant 0 : i32
    %c0_i32_1 = arith.constant 0 : i32
    return %arg0, %c0_i32, %c0_i32_0 : i32, i32, i32
  }
}

</mosaic_0001>

<bundles_post_ra>
// kernel: tpu_custom_call.1
= control target key start
LH: loop header
LB: loop body
LE: loop exit
PB: predicated region body
PF: predicated region fallthrough
CT: control target
= control target key end

     0   :  { %18 = vsyncpa [#allocation3], 0  ;;  %s2963_s0 = inlined_call_operand.hbm [shape: f32[2,8,32], index: 0, kind: input, shape index: {}]   ;;  %s2964_s1 = inlined_call_operand.hbm [shape: f32[2,8,32], index: 1, kind: input, shape index: {}]   ;;  %s2965_s2 = inlined_call_operand.hbm [shape: f32[2,8,32], index: 2, kind: input, shape index: {}]   ;;  %s2966_s3 = inlined_call_operand.hbm [shape: f32[32,32], index: 3, kind: input, shape index: {}]   ;;  %s2967_s4 = inlined_call_operand.hbm [shape: f32[32,32], index: 4, kind: input, shape index: {}]   ;;  %s2968_s5 = inlined_call_operand.hbm [shape: f32[32,32], index: 5, kind: input, shape index: {}]   ;;  %s2969_s6 = inlined_call_operand.hbm [shape: f32[32,32], index: 6, kind: input, shape index: {}]   ;;  %s2970_s7 = inlined_call_operand.vmem [shape: f32[1,32], index: 7, kind: input, shape index: {}]   ;;  %s2971_s8 = inlined_call_operand.vmem [shape: f32[1,32], index: 8, kind: input, shape index: {}]   ;;  %s2972_s9 = inlined_call_operand.vmem [shape: f32[1,32], index: 9, kind: input, shape index: {}]   ;;  %s2973_s10 = inlined_call_operand.vmem [shape: f32[1,32], index: 10, kind: input, shape index: {}]   ;;  %s2974_s11 = inlined_call_operand.vmem [shape: f32[1,32], index: 11, kind: input, shape index: {}]   ;;  %s2975_s12 = inlined_call_operand.vmem [shape: f32[1,32], index: 12, kind: input, shape index: {}]   ;;  %s2976_s13 = inlined_call_operand.hbm [shape: f32[2,8,32], index: 13, kind: output, shape index: {}]  }
   0x1   :  { %19 = vsyncpa [#allocation6], 0 }
   0x2   :  { %20 = vsyncpa [#allocation9], 0 }
   0x3   :  { %21 = vsyncpa [#allocation12], 0 }
   0x4   :  { %22 = vsyncpa [#allocation4], 0  ;;  %s2532_s25 = smov [#allocation5]   ;;  %s2533_s27 = smov [#allocation8]  }
   0x5   :  { %s40_s26 = sshll.u32 %s2532_s25, 4  ;;  %s64_s28 = sshll.u32 %s2533_s27, 4  ;;  %s41_s26 = int_to_ptr.vmem [resolvable:$true] %s40_s26  ;;  %s2619_s28 = int_to_ptr.vmem [resolvable:$true] %s64_s28 }
   0x6   :  { %s2346_s14 = scalar_lea.hbm %s2964_s1, 256 }
   0x7   :  { %p2347_p0 = scmp.ne.s32.totalorder %s2964_s1, %s2346_s14  ;;  %p2350_p1 = scmp.lt.u32.totalorder %s2346_s14, %s2964_s1 }
   0x9   :  { %p2352_p2 = pnand %p2350_p1, %p2347_p0 }
   0xb   :  { %2355 = shalt.err (!%p2352_p2)
}
   0xc   :  { %s2356_s19 = scalar_lea.vmem %s41_s26, 256  ;;  %p2361_p4 = scmp.lt.s32.totalorder %s41_s26, %s41_s26 }
   0xd   :  { %p2357_p3 = scmp.ne.s32.totalorder %s41_s26, %s2356_s19  ;;  %p2362_p5 = scmp.lt.s32.totalorder %s2356_s19, %s2356_s19 }
   0xf   :  { %p2363_p6 = por %p2362_p5, %p2361_p4 }
  0x11   :  { %p2364_p7 = pnand %p2363_p6, %p2357_p3 }
  0x13   :  { %2367 = shalt.err (!%p2364_p7)
}
  0x14   :  { %s2534_s20 = smov 128   ;;  %s2535_s21 = smov 8  }
  0x15   :  { %46 = dma.hbm_to_vmem [thread:$0]  %s2964_s1, 256, %s41_s26, [#allocation6], %s2534_s20, %s2534_s20, %s2535_s21  }
  0x16   :  { %s2368_s27 = scalar_lea.hbm %s2966_s3, 512 }
  0x17   :  { %p2369_p8 = scmp.ne.s32.totalorder %s2966_s3, %s2368_s27  ;;  %p2372_p9 = scmp.lt.u32.totalorder %s2368_s27, %s2966_s3 }
  0x19   :  { %p2374_p10 = pnand %p2372_p9, %p2369_p8 }
  0x1b   :  { %2377 = shalt.err (!%p2374_p10)
}
  0x1c   :  { %s2378_s16 = scalar_lea.vmem %s2619_s28, 512  ;;  %p2383_p12 = scmp.lt.s32.totalorder %s2619_s28, %s2619_s28 }
  0x1d   :  { %p2379_p11 = scmp.ne.s32.totalorder %s2619_s28, %s2378_s16  ;;  %p2384_p13 = scmp.lt.s32.totalorder %s2378_s16, %s2378_s16 }
  0x1f   :  { %p2385_p0 = por %p2384_p13, %p2383_p12 }
  0x21   :  { %p2386_p1 = pnand %p2385_p0, %p2379_p11 }
  0x23   :  { %2389 = shalt.err (!%p2386_p1)
}
  0x24   :  { %70 = dma.hbm_to_vmem [thread:$0]  %s2966_s3, 512, %s2619_s28, [#allocation9], %s2534_s20, %s2534_s20, %s2535_s21  }
  0x25   :  { %s2536_s17 = smov [#allocation11]   ;;  %s2537_s19 = smov [#allocation2]  }
  0x26   :  { %s88_s18 = sshll.u32 %s2536_s17, 4  ;;  %s28_s22 = sshll.u32 %s2537_s19, 4  ;;  %s89_s18 = int_to_ptr.vmem [resolvable:$true] %s88_s18  ;;  %s2656_s22 = int_to_ptr.vmem [resolvable:$true] %s28_s22 }
  0x27   :  { %s2390_s25 = scalar_lea.hbm %s2968_s5, 512 }
  0x28   :  { %p2391_p2 = scmp.ne.s32.totalorder %s2968_s5, %s2390_s25  ;;  %p2394_p3 = scmp.lt.u32.totalorder %s2390_s25, %s2968_s5 }
  0x2a   :  { %p2396_p4 = pnand %p2394_p3, %p2391_p2 }
  0x2c   :  { %2399 = shalt.err (!%p2396_p4)
}
  0x2d   :  { %s2400_s3 = scalar_lea.vmem %s89_s18, 512  ;;  %p2405_p6 = scmp.lt.s32.totalorder %s89_s18, %s89_s18 }
  0x2e   :  { %p2401_p5 = scmp.ne.s32.totalorder %s89_s18, %s2400_s3  ;;  %p2406_p7 = scmp.lt.s32.totalorder %s2400_s3, %s2400_s3 }
  0x30   :  { %p2407_p8 = por %p2406_p7, %p2405_p6 }
  0x32   :  { %p2408_p9 = pnand %p2407_p8, %p2401_p5 }
  0x34   :  { %2411 = shalt.err (!%p2408_p9)
}
  0x35   :  { %94 = dma.hbm_to_vmem [thread:$0]  %s2968_s5, 512, %s89_s18, [#allocation12], %s2534_s20, %s2534_s20, %s2535_s21  }
  0x36   :  { %s2412_s26 = scalar_lea.hbm %s2963_s0, 256 }
  0x37   :  { %p2413_p10 = scmp.ne.s32.totalorder %s2963_s0, %s2412_s26  ;;  %p2416_p11 = scmp.lt.u32.totalorder %s2412_s26, %s2963_s0 }
  0x39   :  { %p2418_p12 = pnand %p2416_p11, %p2413_p10 }
  0x3b   :  { %2421 = shalt.err (!%p2418_p12)
}
  0x3c   :  { %s2422_s25 = scalar_lea.vmem %s2656_s22, 256  ;;  %p2427_p0 = scmp.lt.s32.totalorder %s2656_s22, %s2656_s22 }
  0x3d   :  { %p2423_p13 = scmp.ne.s32.totalorder %s2656_s22, %s2422_s25  ;;  %p2428_p1 = scmp.lt.s32.totalorder %s2422_s25, %s2422_s25 }
  0x3f   :  { %p2429_p2 = por %p2428_p1, %p2427_p0 }
  0x41   :  { %p2430_p3 = pnand %p2429_p2, %p2423_p13 }
  0x43   :  { %2433 = shalt.err (!%p2430_p3)
}
  0x44   :  { %34 = dma.hbm_to_vmem [thread:$0]  %s2963_s0, 256, %s2656_s22, [#allocation3], %s2534_s20, %s2534_s20, %s2535_s21  }
  0x45   :  { %s2538_s27 = smov [#allocation7]   ;;  %s2539_s30 = smov [#allocation10]  }
  0x46   :  { %s52_s29 = sshll.u32 %s2538_s27, 4  ;;  %s76_s14 = sshll.u32 %s2539_s30, 4  ;;  %s53_s29 = int_to_ptr.vmem [resolvable:$true] %s52_s29  ;;  %s2693_s14 = int_to_ptr.vmem [resolvable:$true] %s76_s14 }
  0x47   :  { %s2434_s15 = scalar_lea.hbm %s2965_s2, 256 }
  0x48   :  { %p2435_p4 = scmp.ne.s32.totalorder %s2965_s2, %s2434_s15  ;;  %p2438_p5 = scmp.lt.u32.totalorder %s2434_s15, %s2965_s2 }
  0x4a   :  { %p2440_p6 = pnand %p2438_p5, %p2435_p4 }
  0x4c   :  { %2443 = shalt.err (!%p2440_p6)
}
  0x4d   :  { %s2444_s0 = scalar_lea.vmem %s53_s29, 256  ;;  %p2449_p8 = scmp.lt.s32.totalorder %s53_s29, %s53_s29 }
  0x4e   :  { %p2445_p7 = scmp.ne.s32.totalorder %s53_s29, %s2444_s0  ;;  %p2450_p9 = scmp.lt.s32.totalorder %s2444_s0, %s2444_s0 }
  0x50   :  { %p2451_p10 = por %p2450_p9, %p2449_p8 }
  0x52   :  { %p2452_p11 = pnand %p2451_p10, %p2445_p7 }
  0x54   :  { %2455 = shalt.err (!%p2452_p11)
}
  0x55   :  { %58 = dma.hbm_to_vmem [thread:$0]  %s2965_s2, 256, %s53_s29, [#allocation6], %s2534_s20, %s2534_s20, %s2535_s21  }
  0x56   :  { %s2456_s25 = scalar_lea.hbm %s2967_s4, 512 }
  0x57   :  { %p2457_p12 = scmp.ne.s32.totalorder %s2967_s4, %s2456_s25  ;;  %p2460_p13 = scmp.lt.u32.totalorder %s2456_s25, %s2967_s4 }
  0x59   :  { %p2462_p0 = pnand %p2460_p13, %p2457_p12 }
  0x5b   :  { %2465 = shalt.err (!%p2462_p0)
}
  0x5c   :  { %s2466_s3 = scalar_lea.vmem %s2693_s14, 512  ;;  %p2471_p2 = scmp.lt.s32.totalorder %s2693_s14, %s2693_s14 }
  0x5d   :  { %p2467_p1 = scmp.ne.s32.totalorder %s2693_s14, %s2466_s3  ;;  %p2472_p3 = scmp.lt.s32.totalorder %s2466_s3, %s2466_s3 }
  0x5f   :  { %p2473_p4 = por %p2472_p3, %p2471_p2 }
  0x61   :  { %p2474_p5 = pnand %p2473_p4, %p2467_p1 }
  0x63   :  { %2477 = shalt.err (!%p2474_p5)
}
  0x64   :  { %82 = dma.hbm_to_vmem [thread:$0]  %s2967_s4, 512, %s2693_s14, [#allocation9], %s2534_s20, %s2534_s20, %s2535_s21  }
  0x65   :  { %s2540_s28 = smov [#allocation13]   ;;  %s2478_s26 = scalar_lea.hbm %s2969_s6, 512 }
  0x66   :  { %s100_s15 = sshll.u32 %s2540_s28, 4  ;;  %p2479_p6 = scmp.ne.s32.totalorder %s2969_s6, %s2478_s26  ;;  %s101_s15 = int_to_ptr.vmem [resolvable:$true] %s100_s15 }
  0x67   :  { %p2482_p7 = scmp.lt.u32.totalorder %s2478_s26, %s2969_s6 }
  0x69   :  { %p2484_p8 = pnand %p2482_p7, %p2479_p6 }
  0x6b   :  { %2487 = shalt.err (!%p2484_p8)
}
  0x6c   :  { %s2488_s23 = scalar_lea.vmem %s101_s15, 512  ;;  %p2493_p10 = scmp.lt.s32.totalorder %s101_s15, %s101_s15 }
  0x6d   :  { %p2489_p9 = scmp.ne.s32.totalorder %s101_s15, %s2488_s23  ;;  %p2494_p11 = scmp.lt.s32.totalorder %s2488_s23, %s2488_s23 }
  0x6f   :  { %p2495_p12 = por %p2494_p11, %p2493_p10 }
  0x71   :  { %p2496_p13 = pnand %p2495_p12, %p2489_p9 }
  0x73   :  { %2499 = shalt.err (!%p2496_p13)
}
  0x74   :  { %106 = dma.hbm_to_vmem [thread:$0]  %s2969_s6, 512, %s101_s15, [#allocation12], %s2534_s20, %s2534_s20, %s2535_s21  }
  0x75   :  { %2522 = dma.done.wait [#allocation3], 256  }
  0x76   :  { %2523 = vsyncadd [#allocation3], 4294967040 }
  0x77   :  { %2524 = dma.done.wait [#allocation6], 512  }
  0x78   :  { %2525 = vsyncadd [#allocation6], 4294966784 }
  0x79   :  { %2526 = dma.done.wait [#allocation9], 1024  }
  0x7a   :  { %2527 = vsyncadd [#allocation9], 4294966272 }
  0x7b   :  { %2528 = dma.done.wait [#allocation12], 1024  }
  0x7c   :  { %2529 = vsyncadd [#allocation12], 4294966272  ;;  %vm144_vm0 = vcmask 261120   ;;  %v188_v0 = vld [vmem:[#allocation5] sm:$0xff]  ;;  %v189_v1 = vld [vmem:[#allocation5 + $0x8] sm:$0xff]  ;;  %vm2542_vm1 = vmmov 0  }
  0x7d   :  { %v140_v2 = vld [vmem:[#allocation2] sm:$0xff]  ;;  %v192_v3 = vsel %vm144_vm0, %v188_v0, 0.0  ;;  %v141_v5 = vld [vmem:[#allocation2 + $0x8] sm:$0xff]  ;;  %v195_v6 = vsel %vm144_vm0, %v189_v1, 0.0  ;;  %v321_v28 = vld [vmem:[#allocation10] sm:$0xff]  ;;  %vm491_vm2 = vcmask 64512  }
  0x7e   :  { %v145_v4 = vsel %vm144_vm0, %v140_v2, 0.0  ;;  %193 = vadd.xlane.f32.xlu0 %v192_v3  ;;  %v148_v7 = vsel %vm144_vm0, %v141_v5, 0.0  ;;  %v322_v29 = vld [vmem:[#allocation10 + $0x8] sm:$0xff]  ;;  %v236_v30 = vld [vmem:[#allocation8] sm:$0xff]  ;;  %v323_v33 = vld [vmem:[#allocation10 + $0x10] sm:$0xff]  ;;  %s2547_s2 = smov 24  }
  0x7f   :  { %146 = vadd.xlane.f32.xlu1 %v145_v4  ;;  %v2257_v31 = vpack.c.bf16 %v322_v29, %v321_v28  ;;  %v237_v32 = vld [vmem:[#allocation8 + $0x8] sm:$0xff]  ;;  %v324_v34 = vld [vmem:[#allocation10 + $0x18] sm:$0xff]  ;;  %v238_v37 = vld [vmem:[#allocation8 + $0x10] sm:$0xff]  ;;  %vm1857_vm3 = vcmask 195584   ;;  %vm1854_vm4 = vcmask 130048  }
  0x80   :  { %v2249_v35 = vpack.c.bf16 %v237_v32, %v236_v30  ;;  %v2261_v36 = vpack.c.bf16 %v324_v34, %v323_v33  ;;  %v239_v38 = vld [vmem:[#allocation8 + $0x18] sm:$0xff]  ;;  %v2025_v53 = vld [vmem:[%s2972_s9] ss:$0 sm:$0xff]  ;;  %s2545_s9 = smov 104  }
  0x81   :  { %2258 = vmatprep.subr.bf16.mxu1 %v2257_v31  ;;  %v2253_v39 = vpack.c.bf16 %v239_v38, %v238_v37  ;;  %v2026_v55 = vld [vmem:[%s2973_s10] ss:$0 sm:$0xff]  ;;  %s2546_s10 = smov 16  }
  0x82   :  { %196 = vadd.xlane.f32.xlu0 %v195_v6  ;;  %2260 = vmatpush3.bf16.msra.mxu1 %v2257_v31  ;;  %v2023_v58 = vld [vmem:[%s2970_s7] ss:$0 sm:$0xff]  ;;  %s2543_s7 = smov 120  }
  0x83   :  { %149 = vadd.xlane.f32.xlu1 %v148_v7  ;;  %2250 = vmatprep.subr.bf16.mxu0 %v2249_v35  ;;  %v2024_v63 = vld [vmem:[%s2971_s8] ss:$0 sm:$0xff]  ;;  %s2544_s8 = smov 112  }
  0x84   :  { %2262 = vmatprep.subr.bf16.mxu1 %v2261_v36  ;;  %2252 = vmatpush3.bf16.msra.mxu0 %v2249_v35 }
  0x85   :  { %2254 = vmatprep.subr.bf16.mxu0 %v2253_v39 }
  0x86   :  { %2264 = vmatpush3.bf16.msra.mxu1 %v2261_v36 }
  0x88   :  { %2256 = vmatpush3.bf16.msra.mxu0 %v2253_v39 }
 0x10b   :  { %v194_v8 = vpop.xlane.xlu0 %193 }
 0x10c   :  { %v147_v9 = vpop.xlane.xlu1 %146  ;;  %v198_v10 = vmul.f32 0.03125, %v194_v8  ;;  %v2541_v8 = vmov 0.0  }
 0x10d   :  { %v152_v11 = vmul.f32 0.03125, %v147_v9  ;;  %2158 = vmatprep.subr.mxu1 %v2541_v8 }
 0x10e   :  { %v200_v12 = vsub.f32 %v188_v0, %v198_v10 }
 0x10f   :  { %v2749_v13 = vsub.f32 %v140_v2, %v152_v11  ;;  %v197_v14 = vpop.xlane.xlu0 %196 }
 0x110   :  { %v150_v15 = vpop.xlane.xlu1 %149  ;;  %v199_v16 = vmul.f32 0.03125, %v197_v14  ;;  %v202_v17 = vmul.f32 %v200_v12, %v200_v12  ;;  %v407_v14 = vld [vmem:[#allocation11 + $0x8] sm:$0xff] }
 0x111   :  { %v153_v18 = vmul.f32 0.03125, %v150_v15  ;;  %v156_v19 = vmul.f32 %v2749_v13, %v2749_v13  ;;  %v408_v15 = vld [vmem:[#allocation11 + $0x10] sm:$0xff] }
 0x112   :  { %v201_v20 = vsub.f32 %v189_v1, %v199_v16  ;;  %v204_v21 = vsel %vm144_vm0, %v202_v17, 0.0  ;;  %v409_v17 = vld [vmem:[#allocation11 + $0x18] sm:$0xff] }
 0x113   :  { %v155_v22 = vsub.f32 %v141_v5, %v153_v18  ;;  %205 = vadd.xlane.f32.xlu0 %v204_v21  ;;  %v158_v24 = vsel %vm144_vm0, %v156_v19, 0.0  ;;  %v234_v18 = vld [vmem:[#allocation7] sm:$0xff]  ;;  %v2269_v19 = vpack.c.bf16 %v409_v17, %v408_v15 }
 0x114   :  { %v203_v23 = vmul.f32 %v201_v20, %v201_v20 }
 0x115   :  { %v157_v25 = vmul.f32 %v155_v22, %v155_v22 }
 0x116   :  { %v207_v26 = vsel %vm144_vm0, %v203_v23, 0.0 }
 0x117   :  { %208 = vadd.xlane.f32.xlu1 %v207_v26  ;;  %159 = vadd.xlane.f32.xlu0 %v158_v24  ;;  %v161_v27 = vsel %vm144_vm0, %v157_v25, 0.0 }
 0x11b   :  { %162 = vadd.xlane.f32.xlu1 %v161_v27 }
 0x1a0   :  { %v206_v40 = vpop.xlane.xlu0 %205 }
 0x1a1   :  { %v210_v41 = vmul.f32 0.03125, %v206_v40 }
 0x1a3   :  { %v212_v42 = vadd.f32 1e-05, %v210_v41 }
 0x1a4   :  { %v160_v43 = vpop.xlane.xlu0 %159  ;;  %v209_v44 = vpop.xlane.xlu1 %208 }
 0x1a5   :  { %2298 = vrsqrt.f32 %v212_v42  ;;  %v164_v45 = vmul.f32 0.03125, %v160_v43  ;;  %v211_v46 = vmul.f32 0.03125, %v209_v44 }
 0x1a7   :  { %v166_v47 = vadd.f32 1e-05, %v164_v45  ;;  %v213_v48 = vadd.f32 1e-05, %v211_v46 }
 0x1a8   :  { %v163_v49 = vpop.xlane.xlu1 %162 }
 0x1a9   :  { %2300 = vrsqrt.f32 %v166_v47  ;;  %v165_v50 = vmul.f32 0.03125, %v163_v49 }
 0x1aa   :  { %2302 = vrsqrt.f32 %v213_v48 }
 0x1ab   :  { %v167_v51 = vadd.f32 1e-05, %v165_v50 }
 0x1ad   :  { %2304 = vrsqrt.f32 %v167_v51 }
 0x1af   :  { %v2299_v52 = vpop.eup %2298 }
 0x1b0   :  { %v216_v54 = vmul.f32 %v2299_v52, %v200_v12 }
 0x1b2   :  { %v224_v56 = vmul.f32 %v2025_v53, %v216_v54 }
 0x1b3   :  { %v2301_v57 = vpop.eup %2300 }
 0x1b4   :  { %v2303_v59 = vpop.eup %2302  ;;  %v232_v60 = vadd.f32 %v2026_v55, %v224_v56  ;;  %v170_v61 = vmul.f32 %v2301_v57, %v2749_v13  ;;  %v406_v13 = vld [vmem:[#allocation11] sm:$0xff] }
 0x1b5   :  { %v217_v62 = vmul.f32 %v2303_v59, %v201_v20  ;;  %v2265_v16 = vpack.c.bf16 %v407_v14, %v406_v13  ;;  %v235_v20 = vld [vmem:[#allocation7 + $0x8] sm:$0xff] }
 0x1b6   :  { %2144 = vmatprep.mubr.msk.f32.mxu1 %vm144_vm0, %v232_v60  ;;  %v178_v0 = vmul.f32 %v2023_v58, %v170_v61 }
 0x1b7   :  { %v2305_v1 = vpop.eup %2304  ;;  %v225_v2 = vmul.f32 %v2025_v53, %v217_v62  ;;  %2266 = vmatprep.subr.bf16.mxu0 %v2265_v16 }
 0x1b8   :  { %v171_v3 = vmul.f32 %v2305_v1, %v155_v22  ;;  %v186_v4 = vadd.f32 %v2024_v63, %v178_v0 }
 0x1b9   :  { %v233_v5 = vadd.f32 %v2026_v55, %v225_v2 }
 0x1ba   :  { %v179_v6 = vmul.f32 %v2023_v58, %v171_v3  ;;  %2133 = vmatprep.mubr.msk.f32.mxu0 %vm144_vm0, %v186_v4 }
 0x1bb   :  { %2145 = vmatmul.mubr.msk.f32.vlgmr.msra.gmra.mrb[0].mxu1 %vm144_vm0, %v233_v5 }
 0x1bc   :  { %v187_v7 = vadd.f32 %v2024_v63, %v179_v6  ;;  %2160 = vmatprep.mubr.msk.f32.mxu1 %vm2542_vm1, %v2541_v8 }
 0x1be   :  { %2134 = vmatmul.mubr.msk.f32.vlgmr.msra.gmra.mrb[0].mxu0 %vm144_vm0, %v187_v7 }
 0x1bf   :  { %2155 = vmatprep.mubr.msk.f32.mxu0 %vm144_vm0, %v234_v18  ;;  %2268 = vmatpush3.bf16.msra.mxu0 %v2265_v16 }
 0x1c0   :  { %2270 = vmatprep.subr.bf16.mxu0 %v2269_v19 }
 0x1c3   :  { %2272 = vmatpush3.bf16.msra.mxu0 %v2269_v19 }
 0x1c4   :  { %2178 = vmatprep.subr.mxu0 %v2541_v8 }
 0x1c6   :  { %2156 = vmatmul.mubr.msk.f32.vlgmr.msra.gmra.mrb[2].mxu0 %vm144_vm0, %v235_v20 }
 0x1c7   :  { %2180 = vmatprep.mubr.msk.f32.mxu0 %vm2542_vm1, %v2541_v8 }
 0x28e   :  { %v2777_v9 = vpop.f32.mrb[0].mxu1 }
 0x28f   :  { %v2779_v10 = vpop.f32.mrb[1].mxu1 }
 0x290   :  { %2159 = vmatpush3.xpose.msk.msra.mxu1 %vm491_vm2, %v2779_v10 }
 0x291   :  { %v2783_v11 = vpop.f32.mrb[0].mxu0  ;;  %2163 = vmatprep.subr.mxu1 %v2541_v8 }
 0x292   :  { %v2786_v12 = vpop.f32.mrb[1].mxu0 }
 0x293   :  { %2161 = vmatmul.mubr.msk.f32.vlgmr.msra.gmra.mrb[2].mxu1 %vm491_vm2, %v2786_v12 }
 0x294   :  { %2164 = vmatpush3.xpose.msk.msra.mxu1 %vm491_vm2, %v2777_v9  ;;  %2165 = vmatprep.mubr.msk.f32.mxu1 %vm2542_vm1, %v2541_v8 }
 0x295   :  { %2168 = vmatprep.subr.mxu1 %v2541_v8 }
 0x297   :  { %2166 = vmatmul.mubr.msk.f32.vlgmr.msra.gmra.mrb[4].mxu1 %vm491_vm2, %v2783_v11 }
 0x298   :  { %2170 = vmatprep.mubr.msk.f32.mxu1 %vm2542_vm1, %v2541_v8 }
 0x299   :  { %v2816_v41 = vpop.f32.mrb[2].mxu0 }
 0x29a   :  { %v2818_v42 = vpop.f32.mrb[3].mxu0 }
 0x29b   :  { %2169 = vmatpush3.msra.mxu1 %v2818_v42 }
 0x29c   :  { %2173 = vmatprep.subr.mxu1 %v2541_v8 }
 0x366   :  { %v564_v21 = vpop.f32.mrb[2].mxu1 }
 0x367   :  { %v644_v22 = vmul.f32 0.17677669, %v564_v21  ;;  %v2162_v23 = vpop.f32.mrb[3].mxu1 }
 0x369   :  { %v2037_v24 = vclamps-f32 %v644_v22, 10000.0 }
 0x36a   :  { %v640_v25 = vpop.f32.mrb[4].mxu1 }
 0x36b   :  { %v645_v26 = vmul.f32 0.17677669, %v640_v25  ;;  %v2167_v27 = vpop.f32.mrb[5].mxu1  ;;  %v650_v28 = vsel %vm491_vm2, %v2037_v24, -inf }
 0x36c   :  { %651 = vmax.xlane.f32.xlu0 %v650_v28 }
 0x36d   :  { %v2038_v29 = vclamps-f32 %v645_v26, 10000.0 }
 0x36f   :  { %v653_v30 = vsel %vm491_vm2, %v2038_v29, -inf }
 0x370   :  { %654 = vmax.xlane.f32.xlu1 %v653_v30 }
 0x381   :  { %898 = vrot.lane.b32.xlu1 %v2777_v9, %s2543_s7 }
 0x385   :  { %818 = vrot.lane.b32.xlu1 %v2786_v12, %s2543_s7 }
 0x3f9   :  { %v652_v31 = vpop.xlane.xlu0 %651 }
 0x3fa   :  { %v656_v32 = vsub.f32 %v2037_v24, %v652_v31 }
 0x3fc   :  { %v658_v33 = vmul.f32 1.442695, %v656_v32 }
 0x3fd   :  { %v655_v34 = vpop.xlane.xlu1 %654 }
 0x3fe   :  { %2306 = vpow2.f32 %v658_v33  ;;  %v657_v35 = vsub.f32 %v2038_v29, %v655_v34 }
 0x400   :  { %v660_v36 = vmul.f32 1.442695, %v657_v35 }
 0x401   :  { %v899_v43 = vpop.permute.xlu1 %898 }
 0x402   :  { %2308 = vpow2.f32 %v660_v36 }
 0x405   :  { %v819_v44 = vpop.permute.xlu1 %818 }
 0x408   :  { %v2307_v37 = vpop.eup %2306 }
 0x409   :  { %v662_v38 = vsel %vm491_vm2, %v2307_v37, 0.0 }
 0x40a   :  { %663 = vadd.xlane.f32.xlu0 %v662_v38 }
 0x40c   :  { %v2309_v39 = vpop.eup %2308 }
 0x40d   :  { %v665_v40 = vsel %vm491_vm2, %v2309_v39, 0.0 }
 0x40e   :  { %666 = vadd.xlane.f32.xlu1 %v665_v40 }
 0x41f   :  { %896 = vrot.lane.b32.xlu1 %v2783_v11, %s2543_s7 }
 0x420   :  { %820 = vrot.lane.b32.xlu0 %v2779_v10, %s2543_s7 }
 0x497   :  { %v664_v45 = vpop.xlane.xlu0 %663 }
 0x498   :  { %2310 = vrcp.f32 %v664_v45 }
 0x49b   :  { %v821_v46 = vpop.permute.xlu0 %820  ;;  %v667_v47 = vpop.xlane.xlu1 %666 }
 0x49c   :  { %2312 = vrcp.f32 %v667_v47  ;;  %2179 = vmatpush3.xpose.msk.msra.mxu0 %vm491_vm2, %v821_v46 }
 0x49d   :  { %2188 = vmatprep.subr.mxu0 %v2541_v8 }
 0x49f   :  { %2181 = vmatmul.mubr.msk.f32.vlgmr.msra.gmra.mrb[4].mxu0 %vm491_vm2, %v819_v44  ;;  %v897_v52 = vpop.permute.xlu1 %896 }
 0x4a0   :  { %2190 = vmatprep.mubr.msk.f32.mxu0 %vm2542_vm1, %v2541_v8 }
 0x4a2   :  { %v2311_v48 = vpop.eup %2310 }
 0x4a3   :  { %v669_v49 = vmul.f32 %v2311_v48, %v2307_v37 }
 0x4a5   :  { %2171 = vmatmul.mubr.msk.f32.vlgmr.msra.gmra.mrb[6].mxu1 %vm491_vm2, %v669_v49 }
 0x4a6   :  { %v2313_v50 = vpop.eup %2312  ;;  %2174 = vmatpush3.msra.mxu1 %v2816_v41  ;;  %2175 = vmatprep.mubr.msk.f32.mxu1 %vm2542_vm1, %v2541_v8 }
 0x4a7   :  { %v671_v51 = vmul.f32 %v2313_v50, %v2309_v39  ;;  %2183 = vmatprep.subr.mxu1 %v2541_v8 }
 0x4a9   :  { %2176 = vmatmul.mubr.msk.f32.vlgmr.msra.gmra.mrb[8].mxu1 %vm491_vm2, %v671_v51 }
 0x4aa   :  { %2185 = vmatprep.mubr.msk.f32.mxu1 %vm2542_vm1, %v2541_v8 }
 0x4ad   :  { %2184 = vmatpush3.xpose.msk.msra.mxu1 %vm491_vm2, %v899_v43 }
 0x4ae   :  { %2193 = vmatprep.subr.mxu1 %v2541_v8 }
 0x4b0   :  { %2186 = vmatmul.mubr.msk.f32.vlgmr.msra.gmra.mrb[10].mxu1 %vm491_vm2, %v897_v52 }
 0x4b1   :  { %2195 = vmatprep.mubr.msk.f32.mxu1 %vm2542_vm1, %v2541_v8 }
 0x572   :  { %v892_v53 = vpop.f32.mrb[4].mxu0 }
 0x573   :  { %v974_v54 = vmul.f32 0.17677669, %v892_v53  ;;  %v2182_v55 = vpop.f32.mrb[5].mxu0 }
 0x575   :  { %v2045_v56 = vclamps-f32 %v974_v54, 10000.0 }
 0x577   :  { %v980_v57 = vsel %vm491_vm2, %v2045_v56, -inf }
 0x578   :  { %981 = vmax.xlane.f32.xlu0 %v980_v57  ;;  %v2841_v58 = vpop.f32.mrb[6].mxu1 }
 0x579   :  { %v2172_v59 = vpop.f32.mrb[7].mxu1 }
 0x57c   :  { %v2843_v60 = vpop.f32.mrb[8].mxu1 }
 0x57d   :  { %v2177_v61 = vpop.f32.mrb[9].mxu1 }
 0x583   :  { %v970_v62 = vpop.f32.mrb[10].mxu1 }
 0x584   :  { %v975_v63 = vmul.f32 0.17677669, %v970_v62  ;;  %v2187_v0 = vpop.f32.mrb[11].mxu1 }
 0x586   :  { %v2046_v1 = vclamps-f32 %v975_v63, 10000.0 }
 0x588   :  { %v983_v2 = vsel %vm491_vm2, %v2046_v1, -inf }
 0x589   :  { %984 = vmax.xlane.f32.xlu1 %v983_v2 }
 0x59a   :  { %1080 = vrot.lane.b32.xlu1 %v2816_v41, %s2543_s7 }
 0x59e   :  { %1158 = vrot.lane.b32.xlu1 %v2779_v10, %s2544_s8 }
 0x5a2   :  { %1236 = vrot.lane.b32.xlu1 %v2777_v9, %s2544_s8 }
 0x5a6   :  { %1234 = vrot.lane.b32.xlu1 %v2783_v11, %s2544_s8 }
 0x605   :  { %v982_v3 = vpop.xlane.xlu0 %981 }
 0x606   :  { %v986_v4 = vsub.f32 %v2045_v56, %v982_v3 }
 0x608   :  { %v988_v5 = vmul.f32 1.442695, %v986_v4 }
 0x60a   :  { %2314 = vpow2.f32 %v988_v5 }
 0x614   :  { %v2315_v6 = vpop.eup %2314 }
 0x615   :  { %v992_v7 = vsel %vm491_vm2, %v2315_v6, 0.0 }
 0x616   :  { %v985_v13 = vpop.xlane.xlu1 %984  ;;  %993 = vadd.xlane.f32.xlu0 %v992_v7 }
 0x617   :  { %v987_v15 = vsub.f32 %v2046_v1, %v985_v13 }
 0x619   :  { %v990_v16 = vmul.f32 1.442695, %v987_v15 }
 0x61a   :  { %v1081_v14 = vpop.permute.xlu1 %1080 }
 0x61b   :  { %2194 = vmatpush3.msra.mxu1 %v1081_v14  ;;  %2316 = vpow2.f32 %v990_v16 }
 0x61c   :  { %2203 = vmatprep.subr.mxu1 %v2541_v8 }
 0x61e   :  { %v1159_v23 = vpop.permute.xlu1 %1158 }
 0x622   :  { %v1237_v27 = vpop.permute.xlu1 %1236 }
 0x625   :  { %v2317_v17 = vpop.eup %2316 }
 0x626   :  { %v995_v18 = vsel %vm491_vm2, %v2317_v17, 0.0  ;;  %v1235_v29 = vpop.permute.xlu1 %1234 }
 0x62c   :  { %1003 = vrot.lane.b32.xlu0 %v2818_v42, %s2543_s7 }
 0x64b   :  { %996 = vadd.xlane.f32.xlu0 %v995_v18 }
 0x661   :  { %1156 = vrot.lane.b32.xlu0 %v2786_v12, %s2544_s8 }
 0x6a3   :  { %v994_v19 = vpop.xlane.xlu0 %993 }
 0x6a4   :  { %2318 = vrcp.f32 %v994_v19 }
 0x6a7   :  { %v1004_v20 = vpop.permute.xlu0 %1003 }
 0x6a8   :  { %2189 = vmatpush3.msra.mxu0 %v1004_v20 }
 0x6a9   :  { %2198 = vmatprep.subr.mxu0 %v2541_v8 }
 0x6ae   :  { %v2319_v21 = vpop.eup %2318 }
 0x6af   :  { %v999_v22 = vmul.f32 %v2319_v21, %v2315_v6 }
 0x6b1   :  { %2191 = vmatmul.mubr.msk.f32.vlgmr.msra.gmra.mrb[6].mxu0 %vm491_vm2, %v999_v22 }
 0x6b2   :  { %2199 = vmatpush3.xpose.msk.msra.mxu0 %vm491_vm2, %v1159_v23  ;;  %2200 = vmatprep.mubr.msk.f32.mxu0 %vm2542_vm1, %v2541_v8 }
 0x6b3   :  { %2208 = vmatprep.subr.mxu0 %v2541_v8 }
 0x6d8   :  { %v997_v24 = vpop.xlane.xlu0 %996 }
 0x6d9   :  { %2320 = vrcp.f32 %v997_v24 }
 0x6dc   :  { %v1157_v25 = vpop.permute.xlu0 %1156 }
 0x6dd   :  { %2201 = vmatmul.mubr.msk.f32.vlgmr.msra.gmra.mrb[8].mxu0 %vm491_vm2, %v1157_v25 }
 0x6de   :  { %2210 = vmatprep.mubr.msk.f32.mxu0 %vm2542_vm1, %v2541_v8 }
 0x6e3   :  { %v2321_v26 = vpop.eup %2320 }
 0x6e4   :  { %v1001_v28 = vmul.f32 %v2321_v26, %v2317_v17 }
 0x6e6   :  { %2196 = vmatmul.mubr.msk.f32.vlgmr.msra.gmra.mrb[12].mxu1 %vm491_vm2, %v1001_v28 }
 0x6e7   :  { %2204 = vmatpush3.xpose.msk.msra.mxu1 %vm491_vm2, %v1237_v27  ;;  %2205 = vmatprep.mubr.msk.f32.mxu1 %vm2542_vm1, %v2541_v8 }
 0x6e8   :  { %2213 = vmatprep.subr.mxu1 %v2541_v8 }
 0x6ea   :  { %2206 = vmatmul.mubr.msk.f32.vlgmr.msra.gmra.mrb[14].mxu1 %vm491_vm2, %v1235_v29 }
 0x6eb   :  { %2215 = vmatprep.mubr.msk.f32.mxu1 %vm2542_vm1, %v2541_v8 }
 0x784   :  { %v2878_v30 = vpop.f32.mrb[6].mxu0 }
 0x785   :  { %v2192_v31 = vpop.f32.mrb[7].mxu0 }
 0x7b0   :  { %v1230_v32 = vpop.f32.mrb[8].mxu0 }
 0x7b1   :  { %v1312_v33 = vmul.f32 0.17677669, %v1230_v32  ;;  %v2202_v34 = vpop.f32.mrb[9].mxu0 }
 0x7b3   :  { %v2053_v35 = vclamps-f32 %v1312_v33, 10000.0 }
 0x7b5   :  { %v1318_v36 = vsel %vm491_vm2, %v2053_v35, -inf }
 0x7b6   :  { %1319 = vmax.xlane.f32.xlu0 %v1318_v36 }
 0x7b9   :  { %v2881_v37 = vpop.f32.mrb[12].mxu1 }
 0x7ba   :  { %v2197_v38 = vpop.f32.mrb[13].mxu1 }
 0x7bd   :  { %v1308_v39 = vpop.f32.mrb[14].mxu1 }
 0x7be   :  { %v1313_v40 = vmul.f32 0.17677669, %v1308_v39  ;;  %v2207_v43 = vpop.f32.mrb[15].mxu1 }
 0x7c0   :  { %v2054_v44 = vclamps-f32 %v1313_v40, 10000.0 }
 0x7c2   :  { %v1321_v45 = vsel %vm491_vm2, %v2054_v44, -inf }
 0x7c3   :  { %1322 = vmax.xlane.f32.xlu1 %v1321_v45 }
 0x7d4   :  { %1416 = vrot.lane.b32.xlu1 %v2816_v41, %s2544_s8 }
 0x7d8   :  { %1494 = vrot.lane.b32.xlu1 %v2779_v10, %s2545_s9 }
 0x7dc   :  { %1572 = vrot.lane.b32.xlu1 %v2777_v9, %s2545_s9 }
 0x7e0   :  { %1570 = vrot.lane.b32.xlu1 %v2783_v11, %s2545_s9 }
 0x843   :  { %v1320_v46 = vpop.xlane.xlu0 %1319 }
 0x844   :  { %v1324_v47 = vsub.f32 %v2053_v35, %v1320_v46 }
 0x846   :  { %v1326_v48 = vmul.f32 1.442695, %v1324_v47 }
 0x848   :  { %2322 = vpow2.f32 %v1326_v48 }
 0x850   :  { %v1323_v49 = vpop.xlane.xlu1 %1322 }
 0x851   :  { %v1325_v9 = vsub.f32 %v2054_v44, %v1323_v49 }
 0x852   :  { %v2323_v50 = vpop.eup %2322 }
 0x853   :  { %v1330_v51 = vsel %vm491_vm2, %v2323_v50, 0.0  ;;  %v1328_v10 = vmul.f32 1.442695, %v1325_v9 }
 0x854   :  { %1331 = vadd.xlane.f32.xlu0 %v1330_v51  ;;  %v1417_v52 = vpop.permute.xlu1 %1416 }
 0x855   :  { %2214 = vmatpush3.msra.mxu1 %v1417_v52  ;;  %2324 = vpow2.f32 %v1328_v10 }
 0x856   :  { %2223 = vmatprep.subr.mxu1 %v2541_v8 }
 0x858   :  { %v1495_v59 = vpop.permute.xlu1 %1494 }
 0x85c   :  { %v1573_v63 = vpop.permute.xlu1 %1572 }
 0x85f   :  { %v2325_v11 = vpop.eup %2324 }
 0x860   :  { %v1333_v53 = vsel %vm491_vm2, %v2325_v11, 0.0  ;;  %v1571_v1 = vpop.permute.xlu1 %1570 }
 0x86a   :  { %1340 = vrot.lane.b32.xlu0 %v2818_v42, %s2544_s8 }
 0x889   :  { %1334 = vadd.xlane.f32.xlu0 %v1333_v53 }
 0x89f   :  { %1492 = vrot.lane.b32.xlu0 %v2786_v12, %s2545_s9 }
 0x8e1   :  { %v1332_v54 = vpop.xlane.xlu0 %1331 }
 0x8e2   :  { %2326 = vrcp.f32 %v1332_v54 }
 0x8e5   :  { %v1341_v55 = vpop.permute.xlu0 %1340 }
 0x8e6   :  { %2209 = vmatpush3.msra.mxu0 %v1341_v55 }
 0x8e7   :  { %2218 = vmatprep.subr.mxu0 %v2541_v8 }
 0x8ec   :  { %v2327_v56 = vpop.eup %2326 }
 0x8ed   :  { %v1337_v57 = vmul.f32 %v2327_v56, %v2323_v50 }
 0x8ef   :  { %2211 = vmatmul.mubr.msk.f32.vlgmr.msra.gmra.mrb[10].mxu0 %vm491_vm2, %v1337_v57 }
 0x8f0   :  { %2219 = vmatpush3.xpose.msk.msra.mxu0 %vm491_vm2, %v1495_v59  ;;  %2220 = vmatprep.mubr.msk.f32.mxu0 %vm2542_vm1, %v2541_v8 }
 0x8f1   :  { %2228 = vmatprep.subr.mxu0 %v2541_v8 }
 0x916   :  { %v1335_v61 = vpop.xlane.xlu0 %1334 }
 0x917   :  { %2328 = vrcp.f32 %v1335_v61 }
 0x91a   :  { %v1493_v12 = vpop.permute.xlu0 %1492 }
 0x91b   :  { %2221 = vmatmul.mubr.msk.f32.vlgmr.msra.gmra.mrb[12].mxu0 %vm491_vm2, %v1493_v12 }
 0x91c   :  { %2230 = vmatprep.mubr.msk.f32.mxu0 %vm2542_vm1, %v2541_v8 }
 0x921   :  { %v2329_v62 = vpop.eup %2328 }
 0x922   :  { %v1339_v0 = vmul.f32 %v2329_v62, %v2325_v11 }
 0x924   :  { %2216 = vmatmul.mubr.msk.f32.vlgmr.msra.gmra.mrb[16].mxu1 %vm491_vm2, %v1339_v0 }
 0x925   :  { %2224 = vmatpush3.xpose.msk.msra.mxu1 %vm491_vm2, %v1573_v63  ;;  %2225 = vmatprep.mubr.msk.f32.mxu1 %vm2542_vm1, %v2541_v8  ;;  %v1905_v63 = vld [vmem:[#allocation13 + $0x8] sm:$0xff] }
 0x926   :  { %2233 = vmatprep.subr.mxu1 %v2541_v8 }
 0x928   :  { %2226 = vmatmul.mubr.msk.f32.vlgmr.msra.gmra.mrb[18].mxu1 %vm491_vm2, %v1571_v1  ;;  %v1906_v1 = vld [vmem:[#allocation13 + $0x10] sm:$0xff] }
 0x929   :  { %2235 = vmatprep.mubr.msk.f32.mxu1 %vm2542_vm1, %v2541_v8 }
 0x9c2   :  { %v1412_v2 = vpop.f32.mrb[10].mxu0 }
 0x9c3   :  { %v2212_v3 = vpop.f32.mrb[11].mxu0 }
 0x9ee   :  { %v1566_v4 = vpop.f32.mrb[12].mxu0 }
 0x9ef   :  { %v1648_v5 = vmul.f32 0.17677669, %v1566_v4  ;;  %v2222_v6 = vpop.f32.mrb[13].mxu0 }
 0x9f1   :  { %v2061_v7 = vclamps-f32 %v1648_v5, 10000.0 }
 0x9f3   :  { %v1654_v13 = vsel %vm491_vm2, %v2061_v7, -inf }
 0x9f4   :  { %1655 = vmax.xlane.f32.xlu0 %v1654_v13 }
 0x9f7   :  { %v1488_v14 = vpop.f32.mrb[16].mxu1 }
 0x9f8   :  { %v2217_v15 = vpop.f32.mrb[17].mxu1 }
 0x9fb   :  { %v1644_v16 = vpop.f32.mrb[18].mxu1 }
 0x9fc   :  { %v1649_v17 = vmul.f32 0.17677669, %v1644_v16  ;;  %v2227_v18 = vpop.f32.mrb[19].mxu1  ;;  %v2065_v16 = vld [vmem:[%s2974_s11] ss:$0 sm:$0xff]  ;;  %s2548_s11 = smov [#allocation14]  }
 0x9fd   :  { %v2066_v18 = vld [vmem:[%s2975_s12] ss:$0 sm:$0xff]  ;;  %s2008_s12 = sshll.u32 %s2548_s11, 4  ;;  %s2009_s12 = int_to_ptr.vmem [resolvable:$true] %s2008_s12 }
 0x9fe   :  { %v2062_v19 = vclamps-f32 %v1649_v17, 10000.0  ;;  %s2500_s1 = scalar_lea.vmem %s2009_s12, 256  ;;  %p2505_p1 = scmp.lt.s32.totalorder %s2009_s12, %s2009_s12 }
 0x9ff   :  { %p2501_p0 = scmp.ne.s32.totalorder %s2009_s12, %s2500_s1  ;;  %p2506_p2 = scmp.lt.s32.totalorder %s2500_s1, %s2500_s1 }
 0xa00   :  { %v1657_v20 = vsel %vm491_vm2, %v2062_v19, -inf }
 0xa01   :  { %1658 = vmax.xlane.f32.xlu1 %v1657_v20  ;;  %p2507_p3 = por %p2506_p2, %p2505_p1 }
 0xa03   :  { %p2508_p4 = pnand %p2507_p3, %p2501_p0 }
 0xa12   :  { %1752 = vrot.lane.b32.xlu1 %v2816_v41, %s2545_s9 }
 0xa16   :  { %1830 = vrot.lane.b32.xlu1 %v2878_v30, %s2535_s21 }
 0xa1a   :  { %1832 = vrot.lane.b32.xlu1 %v2881_v37, %s2535_s21 }
 0xa1e   :  { %1840 = vrot.lane.b32.xlu1 %v1488_v14, %s2546_s10 }
 0xa81   :  { %v1656_v8 = vpop.xlane.xlu0 %1655 }
 0xa82   :  { %v1660_v21 = vsub.f32 %v2061_v7, %v1656_v8 }
 0xa84   :  { %v1662_v22 = vmul.f32 1.442695, %v1660_v21 }
 0xa86   :  { %2330 = vpow2.f32 %v1662_v22 }
 0xa8e   :  { %v1659_v23 = vpop.xlane.xlu1 %1658 }
 0xa8f   :  { %v1661_v24 = vsub.f32 %v2062_v19, %v1659_v23 }
 0xa90   :  { %v2331_v25 = vpop.eup %2330 }
 0xa91   :  { %v1664_v26 = vmul.f32 1.442695, %v1661_v24  ;;  %v1666_v27 = vsel %vm491_vm2, %v2331_v25, 0.0 }
 0xa92   :  { %1667 = vadd.xlane.f32.xlu0 %v1666_v27  ;;  %v1753_v41 = vpop.permute.xlu1 %1752 }
 0xa93   :  { %2332 = vpow2.f32 %v1664_v26  ;;  %2234 = vmatpush3.msra.mxu1 %v1753_v41 }
 0xa96   :  { %v1831_v40 = vpop.permute.xlu1 %1830 }
 0xa97   :  { %v1852_v45 = vsel %vm491_vm2, %v2841_v58, %v1831_v40 }
 0xa9a   :  { %v1833_v44 = vpop.permute.xlu1 %1832 }
 0xa9b   :  { %v1853_v51 = vsel %vm491_vm2, %v2843_v60, %v1833_v44  ;;  %v1904_v60 = vld [vmem:[#allocation13] sm:$0xff] }
 0xa9c   :  { %v2273_v0 = vpack.c.bf16 %v1905_v63, %v1904_v60 }
 0xa9d   :  { %v2333_v28 = vpop.eup %2332 }
 0xa9e   :  { %v1669_v29 = vsel %vm491_vm2, %v2333_v28, 0.0  ;;  %v1841_v50 = vpop.permute.xlu1 %1840 }
 0xa9f   :  { %1670 = vadd.xlane.f32.xlu0 %v1669_v29  ;;  %v1856_v52 = vsel %vm1854_vm4, %v1853_v51, %v1841_v50 }
 0xab5   :  { %1676 = vrot.lane.b32.xlu0 %v2818_v42, %s2545_s9 }
 0xab9   :  { %1838 = vrot.lane.b32.xlu0 %v1412_v2, %s2546_s10  ;;  %v1907_v2 = vld [vmem:[#allocation13 + $0x18] sm:$0xff] }
 0xaba   :  { %v2277_v3 = vpack.c.bf16 %v1907_v2, %v1906_v1 }
 0xb1f   :  { %v1668_v30 = vpop.xlane.xlu0 %1667 }
 0xb20   :  { %2334 = vrcp.f32 %v1668_v30 }
 0xb2a   :  { %v2335_v32 = vpop.eup %2334 }
 0xb2b   :  { %v1673_v33 = vmul.f32 %v2335_v32, %v2331_v25 }
 0xb2c   :  { %v1671_v31 = vpop.xlane.xlu0 %1670 }
 0xb2d   :  { %2336 = vrcp.f32 %v1671_v31 }
 0xb30   :  { %v1677_v34 = vpop.permute.xlu0 %1676 }
 0xb31   :  { %2229 = vmatpush3.msra.mxu0 %v1677_v34 }
 0xb32   :  { %2231 = vmatmul.mubr.msk.f32.vlgmr.msra.gmra.mrb[14].mxu0 %vm491_vm2, %v1673_v33  ;;  %2274 = vmatprep.subr.bf16.mxu0 %v2273_v0 }
 0xb33   :  { %2276 = vmatpush3.bf16.msra.mxu0 %v2273_v0 }
 0xb34   :  { %v1839_v43 = vpop.permute.xlu0 %1838  ;;  %2278 = vmatprep.subr.bf16.mxu0 %v2277_v3 }
 0xb35   :  { %v1855_v46 = vsel %vm1854_vm4, %v1852_v45, %v1839_v43 }
 0xb37   :  { %v2337_v35 = vpop.eup %2336  ;;  %2280 = vmatpush3.bf16.msra.mxu0 %v2277_v3 }
 0xb38   :  { %v1675_v36 = vmul.f32 %v2337_v35, %v2333_v28 }
 0xb3a   :  { %2236 = vmatmul.mubr.msk.f32.vlgmr.msra.gmra.mrb[20].mxu1 %vm491_vm2, %v1675_v36 }
 0xc05   :  { %v1748_v37 = vpop.f32.mrb[14].mxu0 }
 0xc06   :  { %1846 = vrot.lane.b32.xlu0 %v1748_v37, %s2547_s2  ;;  %v2232_v38 = vpop.f32.mrb[15].mxu0 }
 0xc0d   :  { %v1824_v42 = vpop.f32.mrb[20].mxu1 }
 0xc0e   :  { %1848 = vrot.lane.b32.xlu1 %v1824_v42, %s2547_s2  ;;  %v2237_v39 = vpop.f32.mrb[21].mxu1 }
 0xc78   :  { %v1847_v47 = vpop.permute.xlu0 %1846 }
 0xc79   :  { %v1858_v48 = vsel %vm1857_vm3, %v1855_v46, %v1847_v47 }
 0xc7a   :  { %v1862_v49 = vsel %vm144_vm0, %v1858_v48, 0.0 }
 0xc7b   :  { %1863 = vadd.xlane.f32.xlu0 %v1862_v49 }
 0xc80   :  { %v1849_v9 = vpop.permute.xlu1 %1848 }
 0xc81   :  { %v1859_v10 = vsel %vm1857_vm3, %v1856_v52, %v1849_v9 }
 0xc82   :  { %v1865_v11 = vsel %vm144_vm0, %v1859_v10, 0.0 }
 0xc83   :  { %1866 = vadd.xlane.f32.xlu1 %v1865_v11 }
 0xd08   :  { %v1864_v53 = vpop.xlane.xlu0 %1863 }
 0xd09   :  { %v1868_v54 = vmul.f32 0.03125, %v1864_v53 }
 0xd0b   :  { %v1870_v58 = vsub.f32 %v1858_v48, %v1868_v54 }
 0xd0d   :  { %v1872_v55 = vmul.f32 %v1870_v58, %v1870_v58 }
 0xd0f   :  { %v1874_v56 = vsel %vm144_vm0, %v1872_v55, 0.0 }
 0xd10   :  { %1875 = vadd.xlane.f32.xlu0 %v1874_v56  ;;  %v1867_v57 = vpop.xlane.xlu1 %1866 }
 0xd11   :  { %v1869_v59 = vmul.f32 0.03125, %v1867_v57 }
 0xd13   :  { %v1871_v61 = vsub.f32 %v1859_v10, %v1869_v59 }
 0xd15   :  { %v1873_v12 = vmul.f32 %v1871_v61, %v1871_v61 }
 0xd17   :  { %v1877_v62 = vsel %vm144_vm0, %v1873_v12, 0.0 }
 0xd18   :  { %1878 = vadd.xlane.f32.xlu0 %v1877_v62 }
 0xd9d   :  { %v1876_v4 = vpop.xlane.xlu0 %1875 }
 0xd9e   :  { %v1880_v5 = vmul.f32 0.03125, %v1876_v4 }
 0xda0   :  { %v1882_v6 = vadd.f32 1e-05, %v1880_v5 }
 0xda2   :  { %2338 = vrsqrt.f32 %v1882_v6 }
 0xda5   :  { %v1879_v7 = vpop.xlane.xlu0 %1878 }
 0xda6   :  { %v1881_v13 = vmul.f32 0.03125, %v1879_v7 }
 0xda8   :  { %v1883_v14 = vadd.f32 1e-05, %v1881_v13 }
 0xdaa   :  { %2340 = vrsqrt.f32 %v1883_v14 }
 0xdac   :  { %v2339_v15 = vpop.eup %2338 }
 0xdad   :  { %v1886_v17 = vmul.f32 %v2339_v15, %v1870_v58 }
 0xdaf   :  { %v1894_v19 = vmul.f32 %v2065_v16, %v1886_v17 }
 0xdb1   :  { %v1902_v20 = vadd.f32 %v2066_v18, %v1894_v19 }
 0xdb3   :  { %2246 = vmatprep.mubr.msk.f32.mxu0 %vm144_vm0, %v1902_v20 }
 0xdb4   :  { %v2341_v8 = vpop.eup %2340 }
 0xdb5   :  { %v1887_v21 = vmul.f32 %v2341_v8, %v1871_v61 }
 0xdb7   :  { %v1895_v22 = vmul.f32 %v2065_v16, %v1887_v21 }
 0xdb9   :  { %v1903_v23 = vadd.f32 %v2066_v18, %v1895_v22 }
 0xdbb   :  { %2247 = vmatmul.mubr.msk.f32.vlgmr.msra.gmra.mrb[16].mxu0 %vm144_vm0, %v1903_v23 }
 0xe8e   :  { %v2248_v24 = vpop.f32.mrb[16].mxu0 }
 0xe8f   :  { %v1992_v25 = vmul.f32 0.70710677, %v2248_v24  ;;  %v1980_v26 = vpop.f32.mrb[17].mxu0  ;;  %v1990_v29 = vmul.f32 0.5, %v2248_v24 }
 0xe90   :  { %v1991_v27 = vmul.f32 0.70710677, %v1980_v26  ;;  %v1989_v31 = vmul.f32 0.5, %v1980_v26 }
 0xe91   :  { %2342 = verf.f32 %v1992_v25 }
 0xe92   :  { %2344 = verf.f32 %v1991_v27 }
 0xe9b   :  { %v2343_v41 = vpop.eup %2342 }
 0xe9c   :  { %v2345_v28 = vpop.eup %2344  ;;  %v1996_v30 = vadd.f32 1.0, %v2343_v41 }
 0xe9d   :  { %v1995_v32 = vadd.f32 1.0, %v2345_v28 }
 0xe9e   :  { %v1998_v33 = vmul.f32 %v1996_v30, %v1990_v29 }
 0xe9f   :  { %v1997_v34 = vmul.f32 %v1995_v32, %v1989_v31 }
 0xea0   :  { %v2000_v35 = vadd.f32 %v1998_v33, %v1903_v23 }
 0xea1   :  { %v1999_v36 = vadd.f32 %v1997_v34, %v1902_v20 }
 0xea2   :  { %2002 = vst.msk [vmem:[#allocation14 + $0x8] sm:$0xff] %vm144_vm0, %v2000_v35 }
 0xea3   :  { %2001 = vst.msk [vmem:[#allocation14] sm:$0xff] %vm144_vm0, %v1999_v36 }
 0xea4   :  { %2511 = shalt.err (!%p2508_p4)
}
 0xea5   :  { %s2512_s0 = scalar_lea.hbm %s2976_s13, 256 }
 0xea6   :  { %p2513_p5 = scmp.ne.s32.totalorder %s2976_s13, %s2512_s0  ;;  %p2516_p6 = scmp.lt.u32.totalorder %s2512_s0, %s2976_s13 }
 0xea8   :  { %p2518_p7 = pnand %p2516_p6, %p2513_p5 }
 0xeaa   :  { %2521 = shalt.err (!%p2518_p7)
}
 0xeab   :  { %2014 = dma.vmem_to_hbm [thread:$0]  %s2009_s12, 256, %s2976_s13, [#allocation4], %s2534_s20, %s2534_s20, %s2535_s21  }
 0xeac   :  { %2530 = dma.done.wait [#allocation4], 256  }
 0xead   :  { %2531 = vsyncadd [#allocation4], 4294967040 }
 0xeae   :  { %2018 = vsyncpa [#allocation3], 1 }
 0xeaf   :  { %2019 = vsyncpa [#allocation6], 1 }
 0xeb0   :  { %2020 = vsyncpa [#allocation9], 1 }
 0xeb1   :  { %2021 = vsyncpa [#allocation12], 1 }
 0xeb2   :  { %2022 = vsyncpa [#allocation4], 1 }

</bundles_post_ra>
